<compile_context>
chip_gen: v7x
topology: tpu7x:2x2x1
jax: 0.10.0
libtpu: 0.0.40
codegen_flags: <defaults>
</compile_context>

<pallas_src>
import math

import jax
import jax.numpy as jnp
from jax.experimental import pallas as pl
from jax.experimental.pallas import tpu as pltpu

# ---- synthetic BERT config (small) ----
B = 2            # batch
S = 8            # sequence length
H = 32           # hidden size
NH = 4           # attention heads
HD = H // NH     # head dim
I = 64           # intermediate (FFN) size
NL = 2           # num_labels
VOCAB = 100
VOCAB_P = 128    # word table padded to 128 rows (lane/tile friendly one-hot)
MAXPOS = 16
NTYPE = 2
NTYPE_P = 8
LAYERS = 2
LN_EPS = 1e-12


def _layer_norm(x, gamma, beta):
    mean = jnp.mean(x, axis=-1, keepdims=True)
    var = jnp.mean(jnp.square(x - mean), axis=-1, keepdims=True)
    return (x - mean) * jax.lax.rsqrt(var + LN_EPS) * gamma + beta


def _gelu(x):
    # TODO(synk): BERT uses exact erf-GELU; tanh approximation used here
    # (erf has no guaranteed Mosaic lowering).  The reference uses the same.
    c = math.sqrt(2.0 / math.pi)
    return 0.5 * x * (1.0 + jnp.tanh(c * (x + 0.044715 * x * x * x)))


# ----------------------------- fused Pallas kernel ---------------------------

def fused_bert_kernel(ids_ref, tt_ref, word_ref, type_ref, pos_ref,
                      embg_ref, embb_ref, bias_ref, pmask_ref,
                      wq_ref, wk_ref, wv_ref, wo_ref, wi_ref, wf_ref,
                      bqkv_ref, vec_ref, bi_ref,
                      clsw_ref, clsb_ref, lab_ref,
                      logits_ref, loss_ref, x_ref):
    l = pl.program_id(0)

    # ---- grid step 0: in-kernel embedding lookup (one-hot MXU gathers) + LN
    @pl.when(l == 0)
    def _():
        onehot_w = (ids_ref[...] ==
                    jax.lax.broadcasted_iota(jnp.int32, (B * S, VOCAB_P), 1)
                    ).astype(jnp.float32)
        onehot_t = (tt_ref[...] ==
                    jax.lax.broadcasted_iota(jnp.int32, (B * S, NTYPE_P), 1)
                    ).astype(jnp.float32)
        emb = (jnp.dot(onehot_w, word_ref[...],
                       preferred_element_type=jnp.float32)
               + jnp.dot(onehot_t, type_ref[...],
                         preferred_element_type=jnp.float32)
               + pos_ref[...])                                # (B*S, H)
        x_ref[...] = _layer_norm(emb, embg_ref[...], embb_ref[...])

    # ---- one encoder layer per grid step (only layer l's weights resident) --
    x = x_ref[...]                               # residual stream (B*S, H) f32
    xb = x.astype(jnp.bfloat16)
    bqkv = bqkv_ref[...]                         # (3, NH, HD) f32 (q bias pre-scaled)
    vec = vec_ref[...]                           # (6, H) f32: bo,ln1_g,ln1_b,bf,ln2_g,ln2_b
    bq2, bk2, bv2 = bqkv[0], bqkv[1], bqkv[2]    # each (NH, HD)

    # Per-head Q/K/V projections: every output starts at lane 0 (no unaligned
    # lane slices); stacking along the MAJOR axis is a cheap tile placement.
    qs, ks, vs = [], [], []
    for h in range(NH):
        qh = jnp.dot(xb, wq_ref[h], preferred_element_type=jnp.float32) + bq2[h:h + 1, :]
        kh = jnp.dot(xb, wk_ref[h], preferred_element_type=jnp.float32) + bk2[h:h + 1, :]
        vh = jnp.dot(xb, wv_ref[h], preferred_element_type=jnp.float32) + bv2[h:h + 1, :]
        qs.append(qh.reshape(B, S, HD))
        ks.append(kh.reshape(B, S, HD))
        vs.append(vh.reshape(B, S, HD))
    q = jnp.concatenate(qs, axis=0)              # (NH*B, S, HD), head-major
    k = jnp.concatenate(ks, axis=0)
    v = jnp.concatenate(vs, axis=0)

    # Head-batched attention: exactly two einsums per layer.  Scale already
    # folded into Wq; bias already materialized head-major -> plain add.
    s = jnp.einsum('bqd,bkd->bqk', q, k, preferred_element_type=jnp.float32)
    s = s + bias_ref[...]                        # (NH*B, S, S)
    m = jnp.max(s, axis=-1, keepdims=True)
    e = jnp.exp(s - m)
    p = e * pl.reciprocal(jnp.sum(e, axis=-1, keepdims=True), approx=True)
    ctx = jnp.einsum('bqk,bkd->bqd', p, v, preferred_element_type=jnp.float32)

    # Output projection applied per head and summed == ctx_full @ Wo + bo,
    # so the head-major context never needs lane re-packing.
    attn = vec[0:1, :]
    for h in range(NH):
        ctx_h = ctx[h * B:(h + 1) * B].reshape(B * S, HD)
        attn = attn + jnp.dot(ctx_h.astype(jnp.bfloat16), wo_ref[h],
                              preferred_element_type=jnp.float32)

    h1 = _layer_norm(x + attn, vec[1:2, :], vec[2:3, :])

    # FFN
    inter = _gelu(jnp.dot(h1.astype(jnp.bfloat16), wi_ref[...],
                          preferred_element_type=jnp.float32) + bi_ref[...])
    ffn = jnp.dot(inter.astype(jnp.bfloat16), wf_ref[...],
                  preferred_element_type=jnp.float32) + vec[3:4, :]
    x_new = _layer_norm(h1 + ffn, vec[4:5, :], vec[5:6, :])
    x_ref[...] = x_new

    # ---- last grid step: masked mean pooling + classifier + BCE loss --------
    @pl.when(l == LAYERS - 1)
    def _():
        hidden = x_new.reshape(B, S, H)
        pm = pmask_ref[...]                                     # (B, S, 1)
        summed = jnp.sum(hidden * pm, axis=1)                   # (B, H)
        # zero-guard only changes the degenerate all-padding case (PyTorch NaNs)
        denom = jnp.maximum(jnp.sum(pm, axis=1), 1.0)           # (B, 1)
        pooled = summed * pl.reciprocal(denom, approx=True)
        logits = jnp.dot(pooled, clsw_ref[...],
                         preferred_element_type=jnp.float32) + clsb_ref[...]
        logits_ref[...] = logits
        labels = lab_ref[...]
        # BCEWithLogitsLoss, mean reduction (numerically stable form; exp(-|x|)
        # keeps log(1+z) well inside f32 precision at these magnitudes).
        bce = (jnp.maximum(logits, 0.0) - logits * labels
               + jnp.log(1.0 + jnp.exp(-jnp.abs(logits))))
        loss_ref[...] = jnp.mean(bce, keepdims=True)


# ------------------------------ specs ----------------------------------------

_c2 = lambda l: (0, 0)
_c3 = lambda l: (0, 0, 0)
_l3 = lambda l: (l, 0, 0)
_l4 = lambda l: (l, 0, 0, 0)

IN_SPECS = [
    pl.BlockSpec((B * S, 1), _c2),            # input ids
    pl.BlockSpec((B * S, 1), _c2),            # token type ids
    pl.BlockSpec((VOCAB_P, H), _c2),          # word table (padded)
    pl.BlockSpec((NTYPE_P, H), _c2),          # type table (padded)
    pl.BlockSpec((B * S, H), _c2),            # position slab (pre-tiled)
    pl.BlockSpec((1, H), _c2),                # emb LN gamma
    pl.BlockSpec((1, H), _c2),                # emb LN beta
    pl.BlockSpec((NH * B, S, S), _c3),        # attention bias, head-major
    pl.BlockSpec((B, S, 1), _c3),             # pooling mask
    pl.BlockSpec((None, NH, H, HD), _l4),     # Wq (scale folded in), per layer
    pl.BlockSpec((None, NH, H, HD), _l4),     # Wk
    pl.BlockSpec((None, NH, H, HD), _l4),     # Wv
    pl.BlockSpec((None, NH, HD, H), _l4),     # Wo (split by head rows)
    pl.BlockSpec((None, H, I), _l3),          # Wi
    pl.BlockSpec((None, I, H), _l3),          # Wf
    pl.BlockSpec((None, 3, NH, HD), _l4),     # q/k/v biases (q bias pre-scaled)
    pl.BlockSpec((None, 6, H), _l3),          # bo, ln1_g, ln1_b, bf, ln2_g, ln2_b
    pl.BlockSpec((None, 1, I), _l3),          # bi
    pl.BlockSpec((H, NL), _c2),               # classifier W
    pl.BlockSpec((1, NL), _c2),               # classifier b
    pl.BlockSpec((B, NL), _c2),               # labels
]
OUT_SPECS = (pl.BlockSpec((B, NL), _c2), pl.BlockSpec((1, 1), _c2))


# ------------------------------ wrapper --------------------------------------

@jax.jit
def forward(packed, input_ids, token_type_ids, attention_mask, labels):
    mask_f = attention_mask.astype(jnp.float32)
    bias_k = (1.0 - mask_f) * jnp.float32(-1e9)                     # (B, S)
    # materialized once, already in head-major (NH*B, S, S) layout
    attn_bias = jnp.broadcast_to(bias_k[None, :, None, :],
                                 (NH, B, S, S)).reshape(NH * B, S, S)
    pool_mask = mask_f.reshape(B, S, 1)
    ids = input_ids.reshape(B * S, 1).astype(jnp.int32)
    tts = token_type_ids.reshape(B * S, 1).astype(jnp.int32)

    logits, loss = pl.pallas_call(
        fused_bert_kernel,
        out_shape=(jax.ShapeDtypeStruct((B, NL), jnp.float32),
                   jax.ShapeDtypeStruct((1, 1), jnp.float32)),
        grid_spec=pltpu.PrefetchScalarGridSpec(
            num_scalar_prefetch=0,
            grid=(LAYERS,),
            in_specs=IN_SPECS,
            out_specs=OUT_SPECS,
            scratch_shapes=[pltpu.VMEM((B * S, H), jnp.float32)]),
        compiler_params=pltpu.CompilerParams(
            dimension_semantics=("arbitrary",),
            vmem_limit_bytes=32 * 1024 * 1024),
    )(ids, tts, packed['word'], packed['type'], packed['pos'],
      packed['embg'], packed['embb'], attn_bias, pool_mask,
      packed['wq'], packed['wk'], packed['wv'], packed['wo'],
      packed['wi'], packed['wf'], packed['bqkv'], packed['vec'], packed['bi'],
      packed['cls_w'], packed['cls_b'], labels.astype(jnp.float32))
    return logits, loss[0, 0]


# --------------------------- parameter init / packing ------------------------

def init_params(key):
    ks = iter(jax.random.split(key, 24))

    def nrm(shape, scale=0.02):
        return (scale * jax.random.normal(next(ks), shape)).astype(jnp.float32)

    def gamma(shape):
        return (1.0 + 0.1 * jax.random.normal(next(ks), shape)).astype(jnp.float32)

    return {
        'word_emb': nrm((VOCAB, H)),
        'pos_emb': nrm((MAXPOS, H)),
        'type_emb': nrm((NTYPE, H)),
        'emb_ln_g': gamma((H,)), 'emb_ln_b': nrm((H,)),
        'wq': nrm((LAYERS, H, H)), 'bq': nrm((LAYERS, H)),
        'wk': nrm((LAYERS, H, H)), 'bk': nrm((LAYERS, H)),
        'wv': nrm((LAYERS, H, H)), 'bv': nrm((LAYERS, H)),
        'wo': nrm((LAYERS, H, H)), 'bo': nrm((LAYERS, H)),
        'ln1_g': gamma((LAYERS, H)), 'ln1_b': nrm((LAYERS, H)),
        'wi': nrm((LAYERS, H, I)), 'bi': nrm((LAYERS, I)),
        'wf': nrm((LAYERS, I, H)), 'bf': nrm((LAYERS, H)),
        'ln2_g': gamma((LAYERS, H)), 'ln2_b': nrm((LAYERS, H)),
        'cls_w': nrm((H, NL)), 'cls_b': nrm((NL,)),
    }


def pack_params(p):
    """One-time weight transform into the kernel's head-split / scaled layout."""
    scale = 1.0 / math.sqrt(HD)

    def heads_w(w):   # (LAYERS, H, H) -> (LAYERS, NH, H_in, HD)
        return jnp.transpose(w.reshape(LAYERS, H, NH, HD), (0, 2, 1, 3))

    def heads_b(b):   # (LAYERS, H) -> (LAYERS, NH, HD)
        return b.reshape(LAYERS, NH, HD)

    word_p = jnp.zeros((VOCAB_P, H), jnp.float32).at[:VOCAB].set(p['word_emb'])
    type_p = jnp.zeros((NTYPE_P, H), jnp.float32).at[:NTYPE].set(p['type_emb'])
    pos_p = jnp.tile(p['pos_emb'][:S], (B, 1))                     # (B*S, H)

    return {
        'word': word_p, 'type': type_p, 'pos': pos_p,
        'embg': p['emb_ln_g'].reshape(1, H), 'embb': p['emb_ln_b'].reshape(1, H),
        'wq': heads_w(p['wq'] * scale).astype(jnp.bfloat16),       # scale folded
        'wk': heads_w(p['wk']).astype(jnp.bfloat16),
        'wv': heads_w(p['wv']).astype(jnp.bfloat16),
        'wo': p['wo'].reshape(LAYERS, NH, HD, H).astype(jnp.bfloat16),
        'wi': p['wi'].astype(jnp.bfloat16),
        'wf': p['wf'].astype(jnp.bfloat16),
        'bqkv': jnp.stack([heads_b(p['bq'] * scale),
                           heads_b(p['bk']), heads_b(p['bv'])], axis=1),
        'vec': jnp.stack([p['bo'], p['ln1_g'], p['ln1_b'],
                          p['bf'], p['ln2_g'], p['ln2_b']], axis=1),
        'bi': p['bi'].reshape(LAYERS, 1, I),
        'cls_w': p['cls_w'], 'cls_b': p['cls_b'].reshape(1, NL),
    }


# --------------------------- pure-JAX reference -------------------------------

def _bf(w):
    # emulate the kernel's bf16 weight storage so the check isolates kernel bugs
    return w.astype(jnp.bfloat16).astype(jnp.float32)


def forward_ref(p, input_ids, token_type_ids, attention_mask, labels):
    positions = jnp.arange(S)[None, :]
    x = (p['word_emb'][input_ids] + p['pos_emb'][positions]
         + p['type_emb'][token_type_ids])
    x = _layer_norm(x, p['emb_ln_g'], p['emb_ln_b'])
    mask_f = attention_mask.astype(jnp.float32)
    bias = (1.0 - mask_f)[:, None, :] * (-1e9)
    for l in range(LAYERS):
        q = x @ _bf(p['wq'][l]) + p['bq'][l]
        k = x @ _bf(p['wk'][l]) + p['bk'][l]
        v = x @ _bf(p['wv'][l]) + p['bv'][l]
        ctxs = []
        for h in range(NH):
            sl = slice(h * HD, (h + 1) * HD)
            sc = jnp.einsum('bqd,bkd->bqk', q[..., sl], k[..., sl]) / math.sqrt(HD)
            pr = jax.nn.softmax(sc + bias, axis=-1)
            ctxs.append(jnp.einsum('bqk,bkd->bqd', pr, v[..., sl]))
        ctx = jnp.concatenate(ctxs, axis=-1)
        h1 = _layer_norm(x + ctx @ _bf(p['wo'][l]) + p['bo'][l],
                         p['ln1_g'][l], p['ln1_b'][l])
        ffn = _gelu(h1 @ _bf(p['wi'][l]) + p['bi'][l]) @ _bf(p['wf'][l]) + p['bf'][l]
        x = _layer_norm(h1 + ffn, p['ln2_g'][l], p['ln2_b'][l])
    pooled = (x * mask_f[:, :, None]).sum(1) / mask_f.sum(1, keepdims=True)
    logits = pooled @ p['cls_w'] + p['cls_b']
    lab = labels.astype(jnp.float32)
    bce = (jnp.maximum(logits, 0.0) - logits * lab
           + jnp.log(1.0 + jnp.exp(-jnp.abs(logits))))
    return logits, jnp.mean(bce)


if __name__ == "__main__":
    key = jax.random.PRNGKey(0)
    pkey, ikey, lkey = jax.random.split(key, 3)
    params = init_params(pkey)
    packed = pack_params(params)

    input_ids = jax.random.randint(ikey, (B, S), 0, VOCAB, dtype=jnp.int32)
    token_type_ids = jnp.concatenate(
        [jnp.zeros((B, S // 2), jnp.int32), jnp.ones((B, S // 2), jnp.int32)],
        axis=1)
    attention_mask = jnp.array([[1] * S,
                                [1] * (S - 3) + [0] * 3], dtype=jnp.int32)
    labels = jax.random.bernoulli(lkey, 0.5, (B, NL)).astype(jnp.int32)

    logits, loss = forward(packed, input_ids, token_type_ids,
                           attention_mask, labels)
    jax.block_until_ready((logits, loss))

    ref_logits, ref_loss = forward_ref(params, input_ids, token_type_ids,
                                       attention_mask, labels)
    assert jnp.allclose(logits, ref_logits, atol=1e-2, rtol=1e-2), (logits, ref_logits)
    assert jnp.allclose(loss, ref_loss, atol=1e-2, rtol=1e-2), (loss, ref_loss)
    print("KERNEL_OK")
</pallas_src>

<mosaic_0001>
module attributes {stable_mosaic.version = 11 : i64} {
  func.func @fused_bert_kernel(%arg0: i32, %arg1: memref<16x1xi32, #tpu.memory_space<vmem>>, %arg2: memref<16x1xi32, #tpu.memory_space<vmem>>, %arg3: memref<128x32xf32, #tpu.memory_space<vmem>>, %arg4: memref<8x32xf32, #tpu.memory_space<vmem>>, %arg5: memref<16x32xf32, #tpu.memory_space<vmem>>, %arg6: memref<1x32xf32, #tpu.memory_space<vmem>>, %arg7: memref<1x32xf32, #tpu.memory_space<vmem>>, %arg8: memref<8x8x8xf32, #tpu.memory_space<vmem>>, %arg9: memref<2x8x1xf32, #tpu.memory_space<vmem>>, %arg10: memref<1x4x32x8xbf16, #tpu.memory_space<vmem>>, %arg11: memref<1x4x32x8xbf16, #tpu.memory_space<vmem>>, %arg12: memref<1x4x32x8xbf16, #tpu.memory_space<vmem>>, %arg13: memref<1x4x8x32xbf16, #tpu.memory_space<vmem>>, %arg14: memref<1x32x64xbf16, #tpu.memory_space<vmem>>, %arg15: memref<1x64x32xbf16, #tpu.memory_space<vmem>>, %arg16: memref<1x3x4x8xf32, #tpu.memory_space<vmem>>, %arg17: memref<1x6x32xf32, #tpu.memory_space<vmem>>, %arg18: memref<1x1x64xf32, #tpu.memory_space<vmem>>, %arg19: memref<32x2xf32, #tpu.memory_space<vmem>>, %arg20: memref<1x2xf32, #tpu.memory_space<vmem>>, %arg21: memref<2x2xf32, #tpu.memory_space<vmem>>, %arg22: memref<2x2xf32, #tpu.memory_space<vmem>>, %arg23: memref<1x1xf32, #tpu.memory_space<vmem>>, %arg24: memref<16x32xf32, #tpu.memory_space<vmem>>) attributes {dimension_semantics = [#tpu.dimension_semantics<arbitrary>], iteration_bounds = array<i64: 2>, scalar_prefetch = 0 : i64, scratch_operands = 1 : i64, tpu.core_type = #tpu.core_type<tc>, window_params = [{pipeline_mode = #tpu.pipeline_mode<synchronous>, transform_indices = @transform_0, window_bounds = array<i64: 16, 1>}, {pipeline_mode = #tpu.pipeline_mode<synchronous>, transform_indices = @transform_1, window_bounds = array<i64: 16, 1>}, {pipeline_mode = #tpu.pipeline_mode<synchronous>, transform_indices = @transform_2, window_bounds = array<i64: 128, 32>}, {pipeline_mode = #tpu.pipeline_mode<synchronous>, transform_indices = @transform_3, window_bounds = array<i64: 8, 32>}, {pipeline_mode = #tpu.pipeline_mode<synchronous>, transform_indices = @transform_4, window_bounds = array<i64: 16, 32>}, {pipeline_mode = #tpu.pipeline_mode<synchronous>, transform_indices = @transform_5, window_bounds = array<i64: 1, 32>}, {pipeline_mode = #tpu.pipeline_mode<synchronous>, transform_indices = @transform_6, window_bounds = array<i64: 1, 32>}, {pipeline_mode = #tpu.pipeline_mode<synchronous>, transform_indices = @transform_7, window_bounds = array<i64: 8, 8, 8>}, {pipeline_mode = #tpu.pipeline_mode<synchronous>, transform_indices = @transform_8, window_bounds = array<i64: 2, 8, 1>}, {transform_indices = @transform_9, window_bounds = array<i64: 1, 4, 32, 8>}, {transform_indices = @transform_10, window_bounds = array<i64: 1, 4, 32, 8>}, {transform_indices = @transform_11, window_bounds = array<i64: 1, 4, 32, 8>}, {transform_indices = @transform_12, window_bounds = array<i64: 1, 4, 8, 32>}, {transform_indices = @transform_13, window_bounds = array<i64: 1, 32, 64>}, {transform_indices = @transform_14, window_bounds = array<i64: 1, 64, 32>}, {transform_indices = @transform_15, window_bounds = array<i64: 1, 3, 4, 8>}, {transform_indices = @transform_16, window_bounds = array<i64: 1, 6, 32>}, {transform_indices = @transform_17, window_bounds = array<i64: 1, 1, 64>}, {pipeline_mode = #tpu.pipeline_mode<synchronous>, transform_indices = @transform_18, window_bounds = array<i64: 32, 2>}, {pipeline_mode = #tpu.pipeline_mode<synchronous>, transform_indices = @transform_19, window_bounds = array<i64: 1, 2>}, {pipeline_mode = #tpu.pipeline_mode<synchronous>, transform_indices = @transform_20, window_bounds = array<i64: 2, 2>}, {pipeline_mode = #tpu.pipeline_mode<synchronous>, transform_indices = @transform_21, window_bounds = array<i64: 2, 2>}, {pipeline_mode = #tpu.pipeline_mode<synchronous>, transform_indices = @transform_22, window_bounds = array<i64: 1, 1>}]} {
    %c0_i32 = arith.constant 0 : i32
    %0 = arith.cmpi eq, %arg0, %c0_i32 : i32
    %1 = arith.extui %0 : i1 to i32
    %c0_i32_0 = arith.constant 0 : i32
    %2 = arith.cmpi ne, %1, %c0_i32_0 : i32
    scf.if %2 {
      %c0_120 = arith.constant 0 : index
      %c0_121 = arith.constant 0 : index
      %228 = vector.load %arg1[%c0_120, %c0_121] : memref<16x1xi32, #tpu.memory_space<vmem>>, vector<16x1xi32>
      %229 = tpu.iota {dimensions = array<i32: 1>} : vector<16x128xi32>
      %230 = vector.broadcast %228 : vector<16x1xi32> to vector<16x128xi32>
      %231 = arith.cmpi eq, %230, %229 : vector<16x128xi32>
      %232 = arith.extui %231 : vector<16x128xi1> to vector<16x128xi32>
      %233 = arith.sitofp %232 : vector<16x128xi32> to vector<16x128xf32>
      %c0_122 = arith.constant 0 : index
      %c0_123 = arith.constant 0 : index
      %234 = vector.load %arg2[%c0_122, %c0_123] : memref<16x1xi32, #tpu.memory_space<vmem>>, vector<16x1xi32>
      %235 = tpu.iota {dimensions = array<i32: 1>} : vector<16x8xi32>
      %236 = vector.broadcast %234 : vector<16x1xi32> to vector<16x8xi32>
      %237 = arith.cmpi eq, %236, %235 : vector<16x8xi32>
      %238 = arith.extui %237 : vector<16x8xi1> to vector<16x8xi32>
      %239 = arith.sitofp %238 : vector<16x8xi32> to vector<16x8xf32>
      %c0_124 = arith.constant 0 : index
      %c0_125 = arith.constant 0 : index
      %240 = vector.load %arg3[%c0_124, %c0_125] : memref<128x32xf32, #tpu.memory_space<vmem>>, vector<128x32xf32>
      %cst_126 = arith.constant dense<0.000000e+00> : vector<16x32xf32>
      %241 = tpu.matmul %233, %240, %cst_126 {dimension_numbers = #tpu.dot_dimension_numbers<[1], [0], [0], [1], [0, 0, 1, 1], [], []>} : vector<16x128xf32>, vector<128x32xf32>, vector<16x32xf32> -> vector<16x32xf32>
      %c0_127 = arith.constant 0 : index
      %c0_128 = arith.constant 0 : index
      %242 = vector.load %arg4[%c0_127, %c0_128] : memref<8x32xf32, #tpu.memory_space<vmem>>, vector<8x32xf32>
      %cst_129 = arith.constant dense<0.000000e+00> : vector<16x32xf32>
      %243 = tpu.matmul %239, %242, %cst_129 {dimension_numbers = #tpu.dot_dimension_numbers<[1], [0], [0], [1], [0, 0, 1, 1], [], []>} : vector<16x8xf32>, vector<8x32xf32>, vector<16x32xf32> -> vector<16x32xf32>
      %244 = arith.addf %241, %243 : vector<16x32xf32>
      %c0_130 = arith.constant 0 : index
      %c0_131 = arith.constant 0 : index
      %245 = vector.load %arg5[%c0_130, %c0_131] : memref<16x32xf32, #tpu.memory_space<vmem>>, vector<16x32xf32>
      %246 = arith.addf %244, %245 : vector<16x32xf32>
      %c0_132 = arith.constant 0 : index
      %c0_133 = arith.constant 0 : index
      %247 = vector.load %arg6[%c0_132, %c0_133] : memref<1x32xf32, #tpu.memory_space<vmem>>, vector<1x32xf32>
      %c0_134 = arith.constant 0 : index
      %c0_135 = arith.constant 0 : index
      %248 = vector.load %arg7[%c0_134, %c0_135] : memref<1x32xf32, #tpu.memory_space<vmem>>, vector<1x32xf32>
      %cst_136 = arith.constant dense<0.000000e+00> : vector<16xf32>
      %249 = vector.multi_reduction <add>, %246, %cst_136 [1] : vector<16x32xf32> to vector<16xf32>
      %250 = vector.shape_cast %249 : vector<16xf32> to vector<16x1xf32>
      %cst_137 = arith.constant 3.200000e+01 : f32
      %251 = vector.broadcast %cst_137 : f32 to vector<16x1xf32>
      %252 = arith.divf %250, %251 : vector<16x1xf32>
      %253 = vector.broadcast %252 : vector<16x1xf32> to vector<16x32xf32>
      %254 = arith.subf %246, %253 : vector<16x32xf32>
      %255 = arith.mulf %254, %254 : vector<16x32xf32>
      %cst_138 = arith.constant dense<0.000000e+00> : vector<16xf32>
      %256 = vector.multi_reduction <add>, %255, %cst_138 [1] : vector<16x32xf32> to vector<16xf32>
      %257 = vector.shape_cast %256 : vector<16xf32> to vector<16x1xf32>
      %cst_139 = arith.constant 3.200000e+01 : f32
      %258 = vector.broadcast %cst_139 : f32 to vector<16x1xf32>
      %259 = arith.divf %257, %258 : vector<16x1xf32>
      %260 = vector.broadcast %252 : vector<16x1xf32> to vector<16x32xf32>
      %261 = arith.subf %246, %260 : vector<16x32xf32>
      %cst_140 = arith.constant 9.99999996E-13 : f32
      %262 = vector.broadcast %cst_140 : f32 to vector<16x1xf32>
      %263 = arith.addf %259, %262 : vector<16x1xf32>
      %264 = math.rsqrt %263 : vector<16x1xf32>
      %265 = vector.broadcast %264 : vector<16x1xf32> to vector<16x32xf32>
      %266 = arith.mulf %261, %265 : vector<16x32xf32>
      %267 = vector.broadcast %247 : vector<1x32xf32> to vector<16x32xf32>
      %268 = arith.mulf %266, %267 : vector<16x32xf32>
      %269 = vector.broadcast %248 : vector<1x32xf32> to vector<16x32xf32>
      %270 = arith.addf %268, %269 : vector<16x32xf32>
      %c0_141 = arith.constant 0 : index
      %c0_142 = arith.constant 0 : index
      %271 = vector.load %arg24[%c0_141, %c0_142] : memref<16x32xf32, #tpu.memory_space<vmem>>, vector<16x32xf32>
      tpu.vector_store %arg24[%c0_141, %c0_142], %270 {strides = array<i32>} : memref<16x32xf32, #tpu.memory_space<vmem>>, vector<16x32xf32>,
    } else {
    }
    %c0 = arith.constant 0 : index
    %c0_1 = arith.constant 0 : index
    %3 = vector.load %arg24[%c0, %c0_1] : memref<16x32xf32, #tpu.memory_space<vmem>>, vector<16x32xf32>
    %4 = arith.truncf %3 : vector<16x32xf32> to vector<16x32xbf16>
    %c0_2 = arith.constant 0 : index
    %c0_3 = arith.constant 0 : index
    %c0_4 = arith.constant 0 : index
    %c0_5 = arith.constant 0 : index
    %5 = vector.load %arg16[%c0_2, %c0_3, %c0_4, %c0_5] : memref<1x3x4x8xf32, #tpu.memory_space<vmem>>, vector<1x3x4x8xf32>
    %6 = vector.shape_cast %5 : vector<1x3x4x8xf32> to vector<3x4x8xf32>
    %c0_6 = arith.constant 0 : index
    %c0_7 = arith.constant 0 : index
    %c0_8 = arith.constant 0 : index
    %7 = vector.load %arg17[%c0_6, %c0_7, %c0_8] : memref<1x6x32xf32, #tpu.memory_space<vmem>>, vector<1x6x32xf32>
    %8 = vector.shape_cast %7 : vector<1x6x32xf32> to vector<6x32xf32>
    %9 = vector.extract_strided_slice %6 {offsets = [0, 0, 0], sizes = [1, 4, 8], strides = [1, 1, 1]} : vector<3x4x8xf32> to vector<1x4x8xf32>
    %10 = vector.shape_cast %9 : vector<1x4x8xf32> to vector<4x8xf32>
    %11 = vector.extract_strided_slice %6 {offsets = [1, 0, 0], sizes = [1, 4, 8], strides = [1, 1, 1]} : vector<3x4x8xf32> to vector<1x4x8xf32>
    %12 = vector.shape_cast %11 : vector<1x4x8xf32> to vector<4x8xf32>
    %13 = vector.extract_strided_slice %6 {offsets = [2, 0, 0], sizes = [1, 4, 8], strides = [1, 1, 1]} : vector<3x4x8xf32> to vector<1x4x8xf32>
    %14 = vector.shape_cast %13 : vector<1x4x8xf32> to vector<4x8xf32>
    %c0_9 = arith.constant 0 : index
    %c0_10 = arith.constant 0 : index
    %c0_11 = arith.constant 0 : index
    %c0_12 = arith.constant 0 : index
    %15 = vector.load %arg10[%c0_9, %c0_10, %c0_11, %c0_12] : memref<1x4x32x8xbf16, #tpu.memory_space<vmem>>, vector<1x1x32x8xbf16>
    %16 = vector.shape_cast %15 : vector<1x1x32x8xbf16> to vector<32x8xbf16>
    %cst = arith.constant dense<0.000000e+00> : vector<16x8xf32>
    %17 = tpu.matmul %4, %16, %cst {dimension_numbers = #tpu.dot_dimension_numbers<[1], [0], [0], [1], [0, 0, 1, 1], [], []>} : vector<16x32xbf16>, vector<32x8xbf16>, vector<16x8xf32> -> vector<16x8xf32>
    %18 = vector.extract_strided_slice %10 {offsets = [0, 0], sizes = [1, 8], strides = [1, 1]} : vector<4x8xf32> to vector<1x8xf32>
    %19 = vector.broadcast %18 : vector<1x8xf32> to vector<16x8xf32>
    %20 = arith.addf %17, %19 : vector<16x8xf32>
    %c0_13 = arith.constant 0 : index
    %c0_14 = arith.constant 0 : index
    %c0_15 = arith.constant 0 : index
    %c0_16 = arith.constant 0 : index
    %21 = vector.load %arg11[%c0_13, %c0_14, %c0_15, %c0_16] : memref<1x4x32x8xbf16, #tpu.memory_space<vmem>>, vector<1x1x32x8xbf16>
    %22 = vector.shape_cast %21 : vector<1x1x32x8xbf16> to vector<32x8xbf16>
    %cst_17 = arith.constant dense<0.000000e+00> : vector<16x8xf32>
    %23 = tpu.matmul %4, %22, %cst_17 {dimension_numbers = #tpu.dot_dimension_numbers<[1], [0], [0], [1], [0, 0, 1, 1], [], []>} : vector<16x32xbf16>, vector<32x8xbf16>, vector<16x8xf32> -> vector<16x8xf32>
    %24 = vector.extract_strided_slice %12 {offsets = [0, 0], sizes = [1, 8], strides = [1, 1]} : vector<4x8xf32> to vector<1x8xf32>
    %25 = vector.broadcast %24 : vector<1x8xf32> to vector<16x8xf32>
    %26 = arith.addf %23, %25 : vector<16x8xf32>
    %c0_18 = arith.constant 0 : index
    %c0_19 = arith.constant 0 : index
    %c0_20 = arith.constant 0 : index
    %c0_21 = arith.constant 0 : index
    %27 = vector.load %arg12[%c0_18, %c0_19, %c0_20, %c0_21] : memref<1x4x32x8xbf16, #tpu.memory_space<vmem>>, vector<1x1x32x8xbf16>
    %28 = vector.shape_cast %27 : vector<1x1x32x8xbf16> to vector<32x8xbf16>
    %cst_22 = arith.constant dense<0.000000e+00> : vector<16x8xf32>
    %29 = tpu.matmul %4, %28, %cst_22 {dimension_numbers = #tpu.dot_dimension_numbers<[1], [0], [0], [1], [0, 0, 1, 1], [], []>} : vector<16x32xbf16>, vector<32x8xbf16>, vector<16x8xf32> -> vector<16x8xf32>
    %30 = vector.extract_strided_slice %14 {offsets = [0, 0], sizes = [1, 8], strides = [1, 1]} : vector<4x8xf32> to vector<1x8xf32>
    %31 = vector.broadcast %30 : vector<1x8xf32> to vector<16x8xf32>
    %32 = arith.addf %29, %31 : vector<16x8xf32>
    %33 = vector.shape_cast %20 : vector<16x8xf32> to vector<2x8x8xf32>
    %34 = vector.shape_cast %26 : vector<16x8xf32> to vector<2x8x8xf32>
    %35 = vector.shape_cast %32 : vector<16x8xf32> to vector<2x8x8xf32>
    %c0_23 = arith.constant 0 : index
    %c1 = arith.constant 1 : index
    %c0_24 = arith.constant 0 : index
    %c0_25 = arith.constant 0 : index
    %36 = vector.load %arg10[%c0_23, %c1, %c0_24, %c0_25] : memref<1x4x32x8xbf16, #tpu.memory_space<vmem>>, vector<1x1x32x8xbf16>
    %37 = vector.shape_cast %36 : vector<1x1x32x8xbf16> to vector<32x8xbf16>
    %cst_26 = arith.constant dense<0.000000e+00> : vector<16x8xf32>
    %38 = tpu.matmul %4, %37, %cst_26 {dimension_numbers = #tpu.dot_dimension_numbers<[1], [0], [0], [1], [0, 0, 1, 1], [], []>} : vector<16x32xbf16>, vector<32x8xbf16>, vector<16x8xf32> -> vector<16x8xf32>
    %39 = vector.extract_strided_slice %10 {offsets = [1, 0], sizes = [1, 8], strides = [1, 1]} : vector<4x8xf32> to vector<1x8xf32>
    %40 = vector.broadcast %39 : vector<1x8xf32> to vector<16x8xf32>
    %41 = arith.addf %38, %40 : vector<16x8xf32>
    %c0_27 = arith.constant 0 : index
    %c1_28 = arith.constant 1 : index
    %c0_29 = arith.constant 0 : index
    %c0_30 = arith.constant 0 : index
    %42 = vector.load %arg11[%c0_27, %c1_28, %c0_29, %c0_30] : memref<1x4x32x8xbf16, #tpu.memory_space<vmem>>, vector<1x1x32x8xbf16>
    %43 = vector.shape_cast %42 : vector<1x1x32x8xbf16> to vector<32x8xbf16>
    %cst_31 = arith.constant dense<0.000000e+00> : vector<16x8xf32>
    %44 = tpu.matmul %4, %43, %cst_31 {dimension_numbers = #tpu.dot_dimension_numbers<[1], [0], [0], [1], [0, 0, 1, 1], [], []>} : vector<16x32xbf16>, vector<32x8xbf16>, vector<16x8xf32> -> vector<16x8xf32>
    %45 = vector.extract_strided_slice %12 {offsets = [1, 0], sizes = [1, 8], strides = [1, 1]} : vector<4x8xf32> to vector<1x8xf32>
    %46 = vector.broadcast %45 : vector<1x8xf32> to vector<16x8xf32>
    %47 = arith.addf %44, %46 : vector<16x8xf32>
    %c0_32 = arith.constant 0 : index
    %c1_33 = arith.constant 1 : index
    %c0_34 = arith.constant 0 : index
    %c0_35 = arith.constant 0 : index
    %48 = vector.load %arg12[%c0_32, %c1_33, %c0_34, %c0_35] : memref<1x4x32x8xbf16, #tpu.memory_space<vmem>>, vector<1x1x32x8xbf16>
    %49 = vector.shape_cast %48 : vector<1x1x32x8xbf16> to vector<32x8xbf16>
    %cst_36 = arith.constant dense<0.000000e+00> : vector<16x8xf32>
    %50 = tpu.matmul %4, %49, %cst_36 {dimension_numbers = #tpu.dot_dimension_numbers<[1], [0], [0], [1], [0, 0, 1, 1], [], []>} : vector<16x32xbf16>, vector<32x8xbf16>, vector<16x8xf32> -> vector<16x8xf32>
    %51 = vector.extract_strided_slice %14 {offsets = [1, 0], sizes = [1, 8], strides = [1, 1]} : vector<4x8xf32> to vector<1x8xf32>
    %52 = vector.broadcast %51 : vector<1x8xf32> to vector<16x8xf32>
    %53 = arith.addf %50, %52 : vector<16x8xf32>
    %54 = vector.shape_cast %41 : vector<16x8xf32> to vector<2x8x8xf32>
    %55 = vector.shape_cast %47 : vector<16x8xf32> to vector<2x8x8xf32>
    %56 = vector.shape_cast %53 : vector<16x8xf32> to vector<2x8x8xf32>
    %c0_37 = arith.constant 0 : index
    %c2 = arith.constant 2 : index
    %c0_38 = arith.constant 0 : index
    %c0_39 = arith.constant 0 : index
    %57 = vector.load %arg10[%c0_37, %c2, %c0_38, %c0_39] : memref<1x4x32x8xbf16, #tpu.memory_space<vmem>>, vector<1x1x32x8xbf16>
    %58 = vector.shape_cast %57 : vector<1x1x32x8xbf16> to vector<32x8xbf16>
    %cst_40 = arith.constant dense<0.000000e+00> : vector<16x8xf32>
    %59 = tpu.matmul %4, %58, %cst_40 {dimension_numbers = #tpu.dot_dimension_numbers<[1], [0], [0], [1], [0, 0, 1, 1], [], []>} : vector<16x32xbf16>, vector<32x8xbf16>, vector<16x8xf32> -> vector<16x8xf32>
    %60 = vector.extract_strided_slice %10 {offsets = [2, 0], sizes = [1, 8], strides = [1, 1]} : vector<4x8xf32> to vector<1x8xf32>
    %61 = vector.broadcast %60 : vector<1x8xf32> to vector<16x8xf32>
    %62 = arith.addf %59, %61 : vector<16x8xf32>
    %c0_41 = arith.constant 0 : index
    %c2_42 = arith.constant 2 : index
    %c0_43 = arith.constant 0 : index
    %c0_44 = arith.constant 0 : index
    %63 = vector.load %arg11[%c0_41, %c2_42, %c0_43, %c0_44] : memref<1x4x32x8xbf16, #tpu.memory_space<vmem>>, vector<1x1x32x8xbf16>
    %64 = vector.shape_cast %63 : vector<1x1x32x8xbf16> to vector<32x8xbf16>
    %cst_45 = arith.constant dense<0.000000e+00> : vector<16x8xf32>
    %65 = tpu.matmul %4, %64, %cst_45 {dimension_numbers = #tpu.dot_dimension_numbers<[1], [0], [0], [1], [0, 0, 1, 1], [], []>} : vector<16x32xbf16>, vector<32x8xbf16>, vector<16x8xf32> -> vector<16x8xf32>
    %66 = vector.extract_strided_slice %12 {offsets = [2, 0], sizes = [1, 8], strides = [1, 1]} : vector<4x8xf32> to vector<1x8xf32>
    %67 = vector.broadcast %66 : vector<1x8xf32> to vector<16x8xf32>
    %68 = arith.addf %65, %67 : vector<16x8xf32>
    %c0_46 = arith.constant 0 : index
    %c2_47 = arith.constant 2 : index
    %c0_48 = arith.constant 0 : index
    %c0_49 = arith.constant 0 : index
    %69 = vector.load %arg12[%c0_46, %c2_47, %c0_48, %c0_49] : memref<1x4x32x8xbf16, #tpu.memory_space<vmem>>, vector<1x1x32x8xbf16>
    %70 = vector.shape_cast %69 : vector<1x1x32x8xbf16> to vector<32x8xbf16>
    %cst_50 = arith.constant dense<0.000000e+00> : vector<16x8xf32>
    %71 = tpu.matmul %4, %70, %cst_50 {dimension_numbers = #tpu.dot_dimension_numbers<[1], [0], [0], [1], [0, 0, 1, 1], [], []>} : vector<16x32xbf16>, vector<32x8xbf16>, vector<16x8xf32> -> vector<16x8xf32>
    %72 = vector.extract_strided_slice %14 {offsets = [2, 0], sizes = [1, 8], strides = [1, 1]} : vector<4x8xf32> to vector<1x8xf32>
    %73 = vector.broadcast %72 : vector<1x8xf32> to vector<16x8xf32>
    %74 = arith.addf %71, %73 : vector<16x8xf32>
    %75 = vector.shape_cast %62 : vector<16x8xf32> to vector<2x8x8xf32>
    %76 = vector.shape_cast %68 : vector<16x8xf32> to vector<2x8x8xf32>
    %77 = vector.shape_cast %74 : vector<16x8xf32> to vector<2x8x8xf32>
    %c0_51 = arith.constant 0 : index
    %c3 = arith.constant 3 : index
    %c0_52 = arith.constant 0 : index
    %c0_53 = arith.constant 0 : index
    %78 = vector.load %arg10[%c0_51, %c3, %c0_52, %c0_53] : memref<1x4x32x8xbf16, #tpu.memory_space<vmem>>, vector<1x1x32x8xbf16>
    %79 = vector.shape_cast %78 : vector<1x1x32x8xbf16> to vector<32x8xbf16>
    %cst_54 = arith.constant dense<0.000000e+00> : vector<16x8xf32>
    %80 = tpu.matmul %4, %79, %cst_54 {dimension_numbers = #tpu.dot_dimension_numbers<[1], [0], [0], [1], [0, 0, 1, 1], [], []>} : vector<16x32xbf16>, vector<32x8xbf16>, vector<16x8xf32> -> vector<16x8xf32>
    %81 = vector.extract_strided_slice %10 {offsets = [3, 0], sizes = [1, 8], strides = [1, 1]} : vector<4x8xf32> to vector<1x8xf32>
    %82 = vector.broadcast %81 : vector<1x8xf32> to vector<16x8xf32>
    %83 = arith.addf %80, %82 : vector<16x8xf32>
    %c0_55 = arith.constant 0 : index
    %c3_56 = arith.constant 3 : index
    %c0_57 = arith.constant 0 : index
    %c0_58 = arith.constant 0 : index
    %84 = vector.load %arg11[%c0_55, %c3_56, %c0_57, %c0_58] : memref<1x4x32x8xbf16, #tpu.memory_space<vmem>>, vector<1x1x32x8xbf16>
    %85 = vector.shape_cast %84 : vector<1x1x32x8xbf16> to vector<32x8xbf16>
    %cst_59 = arith.constant dense<0.000000e+00> : vector<16x8xf32>
    %86 = tpu.matmul %4, %85, %cst_59 {dimension_numbers = #tpu.dot_dimension_numbers<[1], [0], [0], [1], [0, 0, 1, 1], [], []>} : vector<16x32xbf16>, vector<32x8xbf16>, vector<16x8xf32> -> vector<16x8xf32>
    %87 = vector.extract_strided_slice %12 {offsets = [3, 0], sizes = [1, 8], strides = [1, 1]} : vector<4x8xf32> to vector<1x8xf32>
    %88 = vector.broadcast %87 : vector<1x8xf32> to vector<16x8xf32>
    %89 = arith.addf %86, %88 : vector<16x8xf32>
    %c0_60 = arith.constant 0 : index
    %c3_61 = arith.constant 3 : index
    %c0_62 = arith.constant 0 : index
    %c0_63 = arith.constant 0 : index
    %90 = vector.load %arg12[%c0_60, %c3_61, %c0_62, %c0_63] : memref<1x4x32x8xbf16, #tpu.memory_space<vmem>>, vector<1x1x32x8xbf16>
    %91 = vector.shape_cast %90 : vector<1x1x32x8xbf16> to vector<32x8xbf16>
    %cst_64 = arith.constant dense<0.000000e+00> : vector<16x8xf32>
    %92 = tpu.matmul %4, %91, %cst_64 {dimension_numbers = #tpu.dot_dimension_numbers<[1], [0], [0], [1], [0, 0, 1, 1], [], []>} : vector<16x32xbf16>, vector<32x8xbf16>, vector<16x8xf32> -> vector<16x8xf32>
    %93 = vector.extract_strided_slice %14 {offsets = [3, 0], sizes = [1, 8], strides = [1, 1]} : vector<4x8xf32> to vector<1x8xf32>
    %94 = vector.broadcast %93 : vector<1x8xf32> to vector<16x8xf32>
    %95 = arith.addf %92, %94 : vector<16x8xf32>
    %96 = vector.shape_cast %83 : vector<16x8xf32> to vector<2x8x8xf32>
    %97 = vector.shape_cast %89 : vector<16x8xf32> to vector<2x8x8xf32>
    %98 = vector.shape_cast %95 : vector<16x8xf32> to vector<2x8x8xf32>
    %99 = tpu.concatenate %33, %54, %75, %96 in 0 : vector<2x8x8xf32>, vector<2x8x8xf32>, vector<2x8x8xf32>, vector<2x8x8xf32> -> vector<8x8x8xf32>
    %100 = tpu.concatenate %34, %55, %76, %97 in 0 : vector<2x8x8xf32>, vector<2x8x8xf32>, vector<2x8x8xf32>, vector<2x8x8xf32> -> vector<8x8x8xf32>
    %101 = tpu.concatenate %35, %56, %77, %98 in 0 : vector<2x8x8xf32>, vector<2x8x8xf32>, vector<2x8x8xf32>, vector<2x8x8xf32> -> vector<8x8x8xf32>
    "tpu.trace_start"() <{level = 10 : i32, message = "bqd,bkd->bqk"}> : () -> ()
    %cst_65 = arith.constant dense<0.000000e+00> : vector<8x8x8xf32>
    %102 = tpu.matmul %99, %100, %cst_65 {dimension_numbers = #tpu.dot_dimension_numbers<[2], [2], [1], [1], [0, 0, 0, 1, 1, 1], [0], [0]>} : vector<8x8x8xf32>, vector<8x8x8xf32>, vector<8x8x8xf32> -> vector<8x8x8xf32>
    "tpu.trace_stop"() : () -> ()
    %c0_66 = arith.constant 0 : index
    %c0_67 = arith.constant 0 : index
    %c0_68 = arith.constant 0 : index
    %103 = vector.load %arg8[%c0_66, %c0_67, %c0_68] : memref<8x8x8xf32, #tpu.memory_space<vmem>>, vector<8x8x8xf32>
    %104 = arith.addf %102, %103 : vector<8x8x8xf32>
    %cst_69 = arith.constant dense<0xFF800000> : vector<8x8xf32>
    %105 = vector.multi_reduction <maximumf>, %104, %cst_69 [2] : vector<8x8x8xf32> to vector<8x8xf32>
    %106 = vector.shape_cast %105 : vector<8x8xf32> to vector<8x8x1xf32>
    %107 = vector.broadcast %106 : vector<8x8x1xf32> to vector<8x8x8xf32>
    %108 = arith.subf %104, %107 : vector<8x8x8xf32>
    %109 = math.exp %108 : vector<8x8x8xf32>
    %cst_70 = arith.constant dense<0.000000e+00> : vector<8x8xf32>
    %110 = vector.multi_reduction <add>, %109, %cst_70 [2] : vector<8x8x8xf32> to vector<8x8xf32>
    %111 = vector.shape_cast %110 : vector<8x8xf32> to vector<8x8x1xf32>
    %112 = tpu.reciprocal %111 {approx = true} : vector<8x8x1xf32> -> vector<8x8x1xf32>
    %113 = vector.broadcast %112 : vector<8x8x1xf32> to vector<8x8x8xf32>
    %114 = arith.mulf %109, %113 : vector<8x8x8xf32>
    "tpu.trace_start"() <{level = 10 : i32, message = "bqk,bkd->bqd"}> : () -> ()
    %cst_71 = arith.constant dense<0.000000e+00> : vector<8x8x8xf32>
    %115 = tpu.matmul %114, %101, %cst_71 {dimension_numbers = #tpu.dot_dimension_numbers<[2], [1], [1], [2], [0, 0, 0, 1, 1, 2], [0], [0]>} : vector<8x8x8xf32>, vector<8x8x8xf32>, vector<8x8x8xf32> -> vector<8x8x8xf32>
    "tpu.trace_stop"() : () -> ()
    %116 = vector.extract_strided_slice %8 {offsets = [0, 0], sizes = [1, 32], strides = [1, 1]} : vector<6x32xf32> to vector<1x32xf32>
    %117 = vector.extract_strided_slice %115 {offsets = [0, 0, 0], sizes = [2, 8, 8], strides = [1, 1, 1]} : vector<8x8x8xf32> to vector<2x8x8xf32>
    %118 = vector.shape_cast %117 : vector<2x8x8xf32> to vector<16x8xf32>
    %119 = arith.truncf %118 : vector<16x8xf32> to vector<16x8xbf16>
    %c0_72 = arith.constant 0 : index
    %c0_73 = arith.constant 0 : index
    %c0_74 = arith.constant 0 : index
    %c0_75 = arith.constant 0 : index
    %120 = vector.load %arg13[%c0_72, %c0_73, %c0_74, %c0_75] : memref<1x4x8x32xbf16, #tpu.memory_space<vmem>>, vector<1x1x8x32xbf16>
    %121 = vector.shape_cast %120 : vector<1x1x8x32xbf16> to vector<8x32xbf16>
    %cst_76 = arith.constant dense<0.000000e+00> : vector<16x32xf32>
    %122 = tpu.matmul %119, %121, %cst_76 {dimension_numbers = #tpu.dot_dimension_numbers<[1], [0], [0], [1], [0, 0, 1, 1], [], []>} : vector<16x8xbf16>, vector<8x32xbf16>, vector<16x32xf32> -> vector<16x32xf32>
    %123 = vector.broadcast %116 : vector<1x32xf32> to vector<16x32xf32>
    %124 = arith.addf %123, %122 : vector<16x32xf32>
    %125 = vector.extract_strided_slice %115 {offsets = [2, 0, 0], sizes = [2, 8, 8], strides = [1, 1, 1]} : vector<8x8x8xf32> to vector<2x8x8xf32>
    %126 = vector.shape_cast %125 : vector<2x8x8xf32> to vector<16x8xf32>
    %127 = arith.truncf %126 : vector<16x8xf32> to vector<16x8xbf16>
    %c0_77 = arith.constant 0 : index
    %c1_78 = arith.constant 1 : index
    %c0_79 = arith.constant 0 : index
    %c0_80 = arith.constant 0 : index
    %128 = vector.load %arg13[%c0_77, %c1_78, %c0_79, %c0_80] : memref<1x4x8x32xbf16, #tpu.memory_space<vmem>>, vector<1x1x8x32xbf16>
    %129 = vector.shape_cast %128 : vector<1x1x8x32xbf16> to vector<8x32xbf16>
    %cst_81 = arith.constant dense<0.000000e+00> : vector<16x32xf32>
    %130 = tpu.matmul %127, %129, %cst_81 {dimension_numbers = #tpu.dot_dimension_numbers<[1], [0], [0], [1], [0, 0, 1, 1], [], []>} : vector<16x8xbf16>, vector<8x32xbf16>, vector<16x32xf32> -> vector<16x32xf32>
    %131 = arith.addf %124, %130 : vector<16x32xf32>
    %132 = vector.extract_strided_slice %115 {offsets = [4, 0, 0], sizes = [2, 8, 8], strides = [1, 1, 1]} : vector<8x8x8xf32> to vector<2x8x8xf32>
    %133 = vector.shape_cast %132 : vector<2x8x8xf32> to vector<16x8xf32>
    %134 = arith.truncf %133 : vector<16x8xf32> to vector<16x8xbf16>
    %c0_82 = arith.constant 0 : index
    %c2_83 = arith.constant 2 : index
    %c0_84 = arith.constant 0 : index
    %c0_85 = arith.constant 0 : index
    %135 = vector.load %arg13[%c0_82, %c2_83, %c0_84, %c0_85] : memref<1x4x8x32xbf16, #tpu.memory_space<vmem>>, vector<1x1x8x32xbf16>
    %136 = vector.shape_cast %135 : vector<1x1x8x32xbf16> to vector<8x32xbf16>
    %cst_86 = arith.constant dense<0.000000e+00> : vector<16x32xf32>
    %137 = tpu.matmul %134, %136, %cst_86 {dimension_numbers = #tpu.dot_dimension_numbers<[1], [0], [0], [1], [0, 0, 1, 1], [], []>} : vector<16x8xbf16>, vector<8x32xbf16>, vector<16x32xf32> -> vector<16x32xf32>
    %138 = arith.addf %131, %137 : vector<16x32xf32>
    %139 = vector.extract_strided_slice %115 {offsets = [6, 0, 0], sizes = [2, 8, 8], strides = [1, 1, 1]} : vector<8x8x8xf32> to vector<2x8x8xf32>
    %140 = vector.shape_cast %139 : vector<2x8x8xf32> to vector<16x8xf32>
    %141 = arith.truncf %140 : vector<16x8xf32> to vector<16x8xbf16>
    %c0_87 = arith.constant 0 : index
    %c3_88 = arith.constant 3 : index
    %c0_89 = arith.constant 0 : index
    %c0_90 = arith.constant 0 : index
    %142 = vector.load %arg13[%c0_87, %c3_88, %c0_89, %c0_90] : memref<1x4x8x32xbf16, #tpu.memory_space<vmem>>, vector<1x1x8x32xbf16>
    %143 = vector.shape_cast %142 : vector<1x1x8x32xbf16> to vector<8x32xbf16>
    %cst_91 = arith.constant dense<0.000000e+00> : vector<16x32xf32>
    %144 = tpu.matmul %141, %143, %cst_91 {dimension_numbers = #tpu.dot_dimension_numbers<[1], [0], [0], [1], [0, 0, 1, 1], [], []>} : vector<16x8xbf16>, vector<8x32xbf16>, vector<16x32xf32> -> vector<16x32xf32>
    %145 = arith.addf %138, %144 : vector<16x32xf32>
    %146 = arith.addf %3, %145 : vector<16x32xf32>
    %147 = vector.extract_strided_slice %8 {offsets = [1, 0], sizes = [1, 32], strides = [1, 1]} : vector<6x32xf32> to vector<1x32xf32>
    %148 = vector.extract_strided_slice %8 {offsets = [2, 0], sizes = [1, 32], strides = [1, 1]} : vector<6x32xf32> to vector<1x32xf32>
    %cst_92 = arith.constant dense<0.000000e+00> : vector<16xf32>
    %149 = vector.multi_reduction <add>, %146, %cst_92 [1] : vector<16x32xf32> to vector<16xf32>
    %150 = vector.shape_cast %149 : vector<16xf32> to vector<16x1xf32>
    %cst_93 = arith.constant 3.200000e+01 : f32
    %151 = vector.broadcast %cst_93 : f32 to vector<16x1xf32>
    %152 = arith.divf %150, %151 : vector<16x1xf32>
    %153 = vector.broadcast %152 : vector<16x1xf32> to vector<16x32xf32>
    %154 = arith.subf %146, %153 : vector<16x32xf32>
    %155 = arith.mulf %154, %154 : vector<16x32xf32>
    %cst_94 = arith.constant dense<0.000000e+00> : vector<16xf32>
    %156 = vector.multi_reduction <add>, %155, %cst_94 [1] : vector<16x32xf32> to vector<16xf32>
    %157 = vector.shape_cast %156 : vector<16xf32> to vector<16x1xf32>
    %cst_95 = arith.constant 3.200000e+01 : f32
    %158 = vector.broadcast %cst_95 : f32 to vector<16x1xf32>
    %159 = arith.divf %157, %158 : vector<16x1xf32>
    %160 = vector.broadcast %152 : vector<16x1xf32> to vector<16x32xf32>
    %161 = arith.subf %146, %160 : vector<16x32xf32>
    %cst_96 = arith.constant 9.99999996E-13 : f32
    %162 = vector.broadcast %cst_96 : f32 to vector<16x1xf32>
    %163 = arith.addf %159, %162 : vector<16x1xf32>
    %164 = math.rsqrt %163 : vector<16x1xf32>
    %165 = vector.broadcast %164 : vector<16x1xf32> to vector<16x32xf32>
    %166 = arith.mulf %161, %165 : vector<16x32xf32>
    %167 = vector.broadcast %147 : vector<1x32xf32> to vector<16x32xf32>
    %168 = arith.mulf %166, %167 : vector<16x32xf32>
    %169 = vector.broadcast %148 : vector<1x32xf32> to vector<16x32xf32>
    %170 = arith.addf %168, %169 : vector<16x32xf32>
    %171 = arith.truncf %170 : vector<16x32xf32> to vector<16x32xbf16>
    %c0_97 = arith.constant 0 : index
    %c0_98 = arith.constant 0 : index
    %c0_99 = arith.constant 0 : index
    %172 = vector.load %arg14[%c0_97, %c0_98, %c0_99] : memref<1x32x64xbf16, #tpu.memory_space<vmem>>, vector<1x32x64xbf16>
    %173 = vector.shape_cast %172 : vector<1x32x64xbf16> to vector<32x64xbf16>
    %cst_100 = arith.constant dense<0.000000e+00> : vector<16x64xf32>
    %174 = tpu.matmul %171, %173, %cst_100 {dimension_numbers = #tpu.dot_dimension_numbers<[1], [0], [0], [1], [0, 0, 1, 1], [], []>} : vector<16x32xbf16>, vector<32x64xbf16>, vector<16x64xf32> -> vector<16x64xf32>
    %c0_101 = arith.constant 0 : index
    %c0_102 = arith.constant 0 : index
    %c0_103 = arith.constant 0 : index
    %175 = vector.load %arg18[%c0_101, %c0_102, %c0_103] : memref<1x1x64xf32, #tpu.memory_space<vmem>>, vector<1x1x64xf32>
    %176 = vector.shape_cast %175 : vector<1x1x64xf32> to vector<1x64xf32>
    %177 = vector.broadcast %176 : vector<1x64xf32> to vector<16x64xf32>
    %178 = arith.addf %174, %177 : vector<16x64xf32>
    %cst_104 = arith.constant 5.000000e-01 : f32
    %179 = vector.broadcast %cst_104 : f32 to vector<16x64xf32>
    %180 = arith.mulf %179, %178 : vector<16x64xf32>
    %cst_105 = arith.constant 4.471500e-02 : f32
    %181 = vector.broadcast %cst_105 : f32 to vector<16x64xf32>
    %182 = arith.mulf %181, %178 : vector<16x64xf32>
    %183 = arith.mulf %182, %178 : vector<16x64xf32>
    %184 = arith.mulf %183, %178 : vector<16x64xf32>
    %185 = arith.addf %178, %184 : vector<16x64xf32>
    %cst_106 = arith.constant 0.797884583 : f32
    %186 = vector.broadcast %cst_106 : f32 to vector<16x64xf32>
    %187 = arith.mulf %186, %185 : vector<16x64xf32>
    %188 = math.tanh %187 : vector<16x64xf32>
    %cst_107 = arith.constant 1.000000e+00 : f32
    %189 = vector.broadcast %cst_107 : f32 to vector<16x64xf32>
    %190 = arith.addf %189, %188 : vector<16x64xf32>
    %191 = arith.mulf %180, %190 : vector<16x64xf32>
    %192 = arith.truncf %191 : vector<16x64xf32> to vector<16x64xbf16>
    %c0_108 = arith.constant 0 : index
    %c0_109 = arith.constant 0 : index
    %c0_110 = arith.constant 0 : index
    %193 = vector.load %arg15[%c0_108, %c0_109, %c0_110] : memref<1x64x32xbf16, #tpu.memory_space<vmem>>, vector<1x64x32xbf16>
    %194 = vector.shape_cast %193 : vector<1x64x32xbf16> to vector<64x32xbf16>
    %cst_111 = arith.constant dense<0.000000e+00> : vector<16x32xf32>
    %195 = tpu.matmul %192, %194, %cst_111 {dimension_numbers = #tpu.dot_dimension_numbers<[1], [0], [0], [1], [0, 0, 1, 1], [], []>} : vector<16x64xbf16>, vector<64x32xbf16>, vector<16x32xf32> -> vector<16x32xf32>
    %196 = vector.extract_strided_slice %8 {offsets = [3, 0], sizes = [1, 32], strides = [1, 1]} : vector<6x32xf32> to vector<1x32xf32>
    %197 = vector.broadcast %196 : vector<1x32xf32> to vector<16x32xf32>
    %198 = arith.addf %195, %197 : vector<16x32xf32>
    %199 = arith.addf %170, %198 : vector<16x32xf32>
    %200 = vector.extract_strided_slice %8 {offsets = [4, 0], sizes = [1, 32], strides = [1, 1]} : vector<6x32xf32> to vector<1x32xf32>
    %201 = vector.extract_strided_slice %8 {offsets = [5, 0], sizes = [1, 32], strides = [1, 1]} : vector<6x32xf32> to vector<1x32xf32>
    %cst_112 = arith.constant dense<0.000000e+00> : vector<16xf32>
    %202 = vector.multi_reduction <add>, %199, %cst_112 [1] : vector<16x32xf32> to vector<16xf32>
    %203 = vector.shape_cast %202 : vector<16xf32> to vector<16x1xf32>
    %cst_113 = arith.constant 3.200000e+01 : f32
    %204 = vector.broadcast %cst_113 : f32 to vector<16x1xf32>
    %205 = arith.divf %203, %204 : vector<16x1xf32>
    %206 = vector.broadcast %205 : vector<16x1xf32> to vector<16x32xf32>
    %207 = arith.subf %199, %206 : vector<16x32xf32>
    %208 = arith.mulf %207, %207 : vector<16x32xf32>
    %cst_114 = arith.constant dense<0.000000e+00> : vector<16xf32>
    %209 = vector.multi_reduction <add>, %208, %cst_114 [1] : vector<16x32xf32> to vector<16xf32>
    %210 = vector.shape_cast %209 : vector<16xf32> to vector<16x1xf32>
    %cst_115 = arith.constant 3.200000e+01 : f32
    %211 = vector.broadcast %cst_115 : f32 to vector<16x1xf32>
    %212 = arith.divf %210, %211 : vector<16x1xf32>
    %213 = vector.broadcast %205 : vector<16x1xf32> to vector<16x32xf32>
    %214 = arith.subf %199, %213 : vector<16x32xf32>
    %cst_116 = arith.constant 9.99999996E-13 : f32
    %215 = vector.broadcast %cst_116 : f32 to vector<16x1xf32>
    %216 = arith.addf %212, %215 : vector<16x1xf32>
    %217 = math.rsqrt %216 : vector<16x1xf32>
    %218 = vector.broadcast %217 : vector<16x1xf32> to vector<16x32xf32>
    %219 = arith.mulf %214, %218 : vector<16x32xf32>
    %220 = vector.broadcast %200 : vector<1x32xf32> to vector<16x32xf32>
    %221 = arith.mulf %219, %220 : vector<16x32xf32>
    %222 = vector.broadcast %201 : vector<1x32xf32> to vector<16x32xf32>
    %223 = arith.addf %221, %222 : vector<16x32xf32>
    %c0_117 = arith.constant 0 : index
    %c0_118 = arith.constant 0 : index
    %224 = vector.load %arg24[%c0_117, %c0_118] : memref<16x32xf32, #tpu.memory_space<vmem>>, vector<16x32xf32>
    tpu.vector_store %arg24[%c0_117, %c0_118], %223 {strides = array<i32>} : memref<16x32xf32, #tpu.memory_space<vmem>>, vector<16x32xf32>,
    %c1_i32 = arith.constant 1 : i32
    %225 = arith.cmpi eq, %arg0, %c1_i32 : i32
    %226 = arith.extui %225 : i1 to i32
    %c0_i32_119 = arith.constant 0 : i32
    %227 = arith.cmpi ne, %226, %c0_i32_119 : i32
    scf.if %227 {
      %228 = vector.shape_cast %223 : vector<16x32xf32> to vector<2x8x32xf32>
      %c0_120 = arith.constant 0 : index
      %c0_121 = arith.constant 0 : index
      %c0_122 = arith.constant 0 : index
      %229 = vector.load %arg9[%c0_120, %c0_121, %c0_122] : memref<2x8x1xf32, #tpu.memory_space<vmem>>, vector<2x8x1xf32>
      %230 = vector.broadcast %229 : vector<2x8x1xf32> to vector<2x8x32xf32>
      %231 = arith.mulf %228, %230 : vector<2x8x32xf32>
      %cst_123 = arith.constant dense<0.000000e+00> : vector<2x32xf32>
      %232 = vector.multi_reduction <add>, %231, %cst_123 [1] : vector<2x8x32xf32> to vector<2x32xf32>
      %cst_124 = arith.constant dense<0.000000e+00> : vector<2x1xf32>
      %233 = vector.multi_reduction <add>, %229, %cst_124 [1] : vector<2x8x1xf32> to vector<2x1xf32>
      %cst_125 = arith.constant 1.000000e+00 : f32
      %234 = vector.broadcast %cst_125 : f32 to vector<2x1xf32>
      %235 = arith.maximumf %233, %234 : vector<2x1xf32>
      %236 = tpu.reciprocal %235 {approx = true} : vector<2x1xf32> -> vector<2x1xf32>
      %237 = vector.broadcast %236 : vector<2x1xf32> to vector<2x32xf32>
      %238 = arith.mulf %232, %237 : vector<2x32xf32>
      %c0_126 = arith.constant 0 : index
      %c0_127 = arith.constant 0 : index
      %239 = vector.load %arg19[%c0_126, %c0_127] : memref<32x2xf32, #tpu.memory_space<vmem>>, vector<32x2xf32>
      %cst_128 = arith.constant dense<0.000000e+00> : vector<2x2xf32>
      %240 = tpu.matmul %238, %239, %cst_128 {dimension_numbers = #tpu.dot_dimension_numbers<[1], [0], [0], [1], [0, 0, 1, 1], [], []>} : vector<2x32xf32>, vector<32x2xf32>, vector<2x2xf32> -> vector<2x2xf32>
      %c0_129 = arith.constant 0 : index
      %c0_130 = arith.constant 0 : index
      %241 = vector.load %arg20[%c0_129, %c0_130] : memref<1x2xf32, #tpu.memory_space<vmem>>, vector<1x2xf32>
      %242 = vector.broadcast %241 : vector<1x2xf32> to vector<2x2xf32>
      %243 = arith.addf %240, %242 : vector<2x2xf32>
      %c0_131 = arith.constant 0 : index
      %c0_132 = arith.constant 0 : index
      %244 = vector.load %arg22[%c0_131, %c0_132] : memref<2x2xf32, #tpu.memory_space<vmem>>, vector<2x2xf32>
      tpu.vector_store %arg22[%c0_131, %c0_132], %243 {strides = array<i32>} : memref<2x2xf32, #tpu.memory_space<vmem>>, vector<2x2xf32>,
      %c0_133 = arith.constant 0 : index
      %c0_134 = arith.constant 0 : index
      %245 = vector.load %arg21[%c0_133, %c0_134] : memref<2x2xf32, #tpu.memory_space<vmem>>, vector<2x2xf32>
      %cst_135 = arith.constant 0.000000e+00 : f32
      %246 = vector.broadcast %cst_135 : f32 to vector<2x2xf32>
      %247 = arith.maximumf %243, %246 : vector<2x2xf32>
      %248 = arith.mulf %243, %245 : vector<2x2xf32>
      %249 = arith.subf %247, %248 : vector<2x2xf32>
      %250 = math.absf %243 : vector<2x2xf32>
      %cst_136 = arith.constant 0.000000e+00 : f32
      %251 = vector.broadcast %cst_136 : f32 to vector<2x2xf32>
      %252 = arith.subf %251, %250 : vector<2x2xf32>
      %253 = math.exp %252 : vector<2x2xf32>
      %cst_137 = arith.constant 1.000000e+00 : f32
      %254 = vector.broadcast %cst_137 : f32 to vector<2x2xf32>
      %255 = arith.addf %254, %253 : vector<2x2xf32>
      %256 = math.log %255 : vector<2x2xf32>
      %257 = arith.addf %249, %256 : vector<2x2xf32>
      %258 = vector.shape_cast %257 : vector<2x2xf32> to vector<1x2x2xf32>
      %cst_138 = arith.constant dense<0.000000e+00> : vector<1xf32>
      %259 = vector.multi_reduction <add>, %258, %cst_138 [1, 2] : vector<1x2x2xf32> to vector<1xf32>
      %260 = vector.shape_cast %259 : vector<1xf32> to vector<1x1x1xf32>
      %261 = vector.extract %260[0, 0, 0] : f32 from vector<1x1x1xf32>
      %262 = vector.broadcast %261 : f32 to vector<1x1xf32>
      %cst_139 = arith.constant 4.000000e+00 : f32
      %263 = vector.broadcast %cst_139 : f32 to vector<1x1xf32>
      %264 = arith.divf %262, %263 : vector<1x1xf32>
      %c0_140 = arith.constant 0 : index
      %c0_141 = arith.constant 0 : index
      %265 = vector.load %arg23[%c0_140, %c0_141] : memref<1x1xf32, #tpu.memory_space<vmem>>, vector<1x1xf32>
      tpu.vector_store %arg23[%c0_140, %c0_141], %264 {strides = array<i32>} : memref<1x1xf32, #tpu.memory_space<vmem>>, vector<1x1xf32>,
    } else {
    }
    return
  }
  func.func @transform_0(%arg0: i32) -> (i32, i32) {
    %c0_i32 = arith.constant 0 : i32
    %c0_i32_0 = arith.constant 0 : i32
    %c0_i32_1 = arith.constant 0 : i32
    return %c0_i32, %c0_i32_0 : i32, i32
  }
  func.func @transform_1(%arg0: i32) -> (i32, i32) {
    %c0_i32 = arith.constant 0 : i32
    %c0_i32_0 = arith.constant 0 : i32
    %c0_i32_1 = arith.constant 0 : i32
    return %c0_i32, %c0_i32_0 : i32, i32
  }
  func.func @transform_2(%arg0: i32) -> (i32, i32) {
    %c0_i32 = arith.constant 0 : i32
    %c0_i32_0 = arith.constant 0 : i32
    %c0_i32_1 = arith.constant 0 : i32
    return %c0_i32, %c0_i32_0 : i32, i32
  }
  func.func @transform_3(%arg0: i32) -> (i32, i32) {
    %c0_i32 = arith.constant 0 : i32
    %c0_i32_0 = arith.constant 0 : i32
    %c0_i32_1 = arith.constant 0 : i32
    return %c0_i32, %c0_i32_0 : i32, i32
  }
  func.func @transform_4(%arg0: i32) -> (i32, i32) {
    %c0_i32 = arith.constant 0 : i32
    %c0_i32_0 = arith.constant 0 : i32
    %c0_i32_1 = arith.constant 0 : i32
    return %c0_i32, %c0_i32_0 : i32, i32
  }
  func.func @transform_5(%arg0: i32) -> (i32, i32) {
    %c0_i32 = arith.constant 0 : i32
    %c0_i32_0 = arith.constant 0 : i32
    %c0_i32_1 = arith.constant 0 : i32
    return %c0_i32, %c0_i32_0 : i32, i32
  }
  func.func @transform_6(%arg0: i32) -> (i32, i32) {
    %c0_i32 = arith.constant 0 : i32
    %c0_i32_0 = arith.constant 0 : i32
    %c0_i32_1 = arith.constant 0 : i32
    return %c0_i32, %c0_i32_0 : i32, i32
  }
  func.func @transform_7(%arg0: i32) -> (i32, i32, i32) {
    %c0_i32 = arith.constant 0 : i32
    %c0_i32_0 = arith.constant 0 : i32
    %c0_i32_1 = arith.constant 0 : i32
    %c0_i32_2 = arith.constant 0 : i32
    return %c0_i32, %c0_i32_0, %c0_i32_1 : i32, i32, i32
  }
  func.func @transform_8(%arg0: i32) -> (i32, i32, i32) {
    %c0_i32 = arith.constant 0 : i32
    %c0_i32_0 = arith.constant 0 : i32
    %c0_i32_1 = arith.constant 0 : i32
    %c0_i32_2 = arith.constant 0 : i32
    return %c0_i32, %c0_i32_0, %c0_i32_1 : i32, i32, i32
  }
  func.func @transform_9(%arg0: i32) -> (i32, i32, i32, i32) {
    %c0_i32 = arith.constant 0 : i32
    %c0_i32_0 = arith.constant 0 : i32
    %c0_i32_1 = arith.constant 0 : i32
    %c0_i32_2 = arith.constant 0 : i32
    return %arg0, %c0_i32, %c0_i32_0, %c0_i32_1 : i32, i32, i32, i32
  }
  func.func @transform_10(%arg0: i32) -> (i32, i32, i32, i32) {
    %c0_i32 = arith.constant 0 : i32
    %c0_i32_0 = arith.constant 0 : i32
    %c0_i32_1 = arith.constant 0 : i32
    %c0_i32_2 = arith.constant 0 : i32
    return %arg0, %c0_i32, %c0_i32_0, %c0_i32_1 : i32, i32, i32, i32
  }
  func.func @transform_11(%arg0: i32) -> (i32, i32, i32, i32) {
    %c0_i32 = arith.constant 0 : i32
    %c0_i32_0 = arith.constant 0 : i32
    %c0_i32_1 = arith.constant 0 : i32
    %c0_i32_2 = arith.constant 0 : i32
    return %arg0, %c0_i32, %c0_i32_0, %c0_i32_1 : i32, i32, i32, i32
  }
  func.func @transform_12(%arg0: i32) -> (i32, i32, i32, i32) {
    %c0_i32 = arith.constant 0 : i32
    %c0_i32_0 = arith.constant 0 : i32
    %c0_i32_1 = arith.constant 0 : i32
    %c0_i32_2 = arith.constant 0 : i32
    return %arg0, %c0_i32, %c0_i32_0, %c0_i32_1 : i32, i32, i32, i32
  }
  func.func @transform_13(%arg0: i32) -> (i32, i32, i32) {
    %c0_i32 = arith.constant 0 : i32
    %c0_i32_0 = arith.constant 0 : i32
    %c0_i32_1 = arith.constant 0 : i32
    return %arg0, %c0_i32, %c0_i32_0 : i32, i32, i32
  }
  func.func @transform_14(%arg0: i32) -> (i32, i32, i32) {
    %c0_i32 = arith.constant 0 : i32
    %c0_i32_0 = arith.constant 0 : i32
    %c0_i32_1 = arith.constant 0 : i32
    return %arg0, %c0_i32, %c0_i32_0 : i32, i32, i32
  }
  func.func @transform_15(%arg0: i32) -> (i32, i32, i32, i32) {
    %c0_i32 = arith.constant 0 : i32
    %c0_i32_0 = arith.constant 0 : i32
    %c0_i32_1 = arith.constant 0 : i32
    %c0_i32_2 = arith.constant 0 : i32
    return %arg0, %c0_i32, %c0_i32_0, %c0_i32_1 : i32, i32, i32, i32
  }
  func.func @transform_16(%arg0: i32) -> (i32, i32, i32) {
    %c0_i32 = arith.constant 0 : i32
    %c0_i32_0 = arith.constant 0 : i32
    %c0_i32_1 = arith.constant 0 : i32
    return %arg0, %c0_i32, %c0_i32_0 : i32, i32, i32
  }
  func.func @transform_17(%arg0: i32) -> (i32, i32, i32) {
    %c0_i32 = arith.constant 0 : i32
    %c0_i32_0 = arith.constant 0 : i32
    %c0_i32_1 = arith.constant 0 : i32
    return %arg0, %c0_i32, %c0_i32_0 : i32, i32, i32
  }
  func.func @transform_18(%arg0: i32) -> (i32, i32) {
    %c0_i32 = arith.constant 0 : i32
    %c0_i32_0 = arith.constant 0 : i32
    %c0_i32_1 = arith.constant 0 : i32
    return %c0_i32, %c0_i32_0 : i32, i32
  }
  func.func @transform_19(%arg0: i32) -> (i32, i32) {
    %c0_i32 = arith.constant 0 : i32
    %c0_i32_0 = arith.constant 0 : i32
    %c0_i32_1 = arith.constant 0 : i32
    return %c0_i32, %c0_i32_0 : i32, i32
  }
  func.func @transform_20(%arg0: i32) -> (i32, i32) {
    %c0_i32 = arith.constant 0 : i32
    %c0_i32_0 = arith.constant 0 : i32
    %c0_i32_1 = arith.constant 0 : i32
    return %c0_i32, %c0_i32_0 : i32, i32
  }
  func.func @transform_21(%arg0: i32) -> (i32, i32) {
    %c0_i32 = arith.constant 0 : i32
    %c0_i32_0 = arith.constant 0 : i32
    %c0_i32_1 = arith.constant 0 : i32
    return %c0_i32, %c0_i32_0 : i32, i32
  }
  func.func @transform_22(%arg0: i32) -> (i32, i32) {
    %c0_i32 = arith.constant 0 : i32
    %c0_i32_0 = arith.constant 0 : i32
    %c0_i32_1 = arith.constant 0 : i32
    return %c0_i32, %c0_i32_0 : i32, i32
  }
}

</mosaic_0001>

<bundles_post_ra>
// kernel: forward.1
= control target key start
LH: loop header
LB: loop body
LE: loop exit
PB: predicated region body
PF: predicated region fallthrough
CT: control target
= control target key end

     0   :  { %s5419_s0 = inlined_call_operand.vmem [shape: s32[16,1], index: 0, kind: input, shape index: {}]   ;;  %s5420_s1 = inlined_call_operand.vmem [shape: s32[16,1], index: 1, kind: input, shape index: {}]   ;;  %s5421_s2 = inlined_call_operand.vmem [shape: f32[128,32], index: 2, kind: input, shape index: {}]   ;;  %s5422_s3 = inlined_call_operand.vmem [shape: f32[8,32], index: 3, kind: input, shape index: {}]   ;;  %s5423_s4 = inlined_call_operand.vmem [shape: f32[16,32], index: 4, kind: input, shape index: {}]   ;;  %s5424_s5 = inlined_call_operand.vmem [shape: f32[1,32], index: 5, kind: input, shape index: {}]   ;;  %s5425_s6 = inlined_call_operand.vmem [shape: f32[1,32], index: 6, kind: input, shape index: {}]   ;;  %s5426_s7 = inlined_call_operand.vmem [shape: f32[8,8,8], index: 7, kind: input, shape index: {}]   ;;  %s5427_s8 = inlined_call_operand.vmem [shape: f32[2,8,1], index: 8, kind: input, shape index: {}]   ;;  %s5428_s9 = inlined_call_operand.vmem [shape: bf16[2,4,32,8], index: 9, kind: input, shape index: {}]   ;;  %s5429_s10 = inlined_call_operand.vmem [shape: bf16[2,4,32,8], index: 10, kind: input, shape index: {}]   ;;  %s5430_s11 = inlined_call_operand.vmem [shape: bf16[2,4,32,8], index: 11, kind: input, shape index: {}]   ;;  %s5431_s12 = inlined_call_operand.vmem [shape: bf16[2,4,8,32], index: 12, kind: input, shape index: {}]   ;;  %s5432_s13 = inlined_call_operand.vmem [shape: bf16[2,32,64], index: 13, kind: input, shape index: {}]   ;;  %s5433_s14 = inlined_call_operand.vmem [shape: bf16[2,64,32], index: 14, kind: input, shape index: {}]   ;;  %s5434_s15 = inlined_call_operand.vmem [shape: f32[2,3,4,8], index: 15, kind: input, shape index: {}]   ;;  %s5435_s16 = inlined_call_operand.vmem [shape: f32[2,6,32], index: 16, kind: input, shape index: {}]   ;;  %s5436_s17 = inlined_call_operand.vmem [shape: f32[2,1,64], index: 17, kind: input, shape index: {}]   ;;  %s5437_s18 = inlined_call_operand.vmem [shape: f32[32,2], index: 18, kind: input, shape index: {}]   ;;  %s5438_s19 = inlined_call_operand.vmem [shape: f32[1,2], index: 19, kind: input, shape index: {}]   ;;  %s5439_s20 = inlined_call_operand.vmem [shape: f32[2,2], index: 20, kind: input, shape index: {}]   ;;  %s5440_s21 = inlined_call_operand.hbm [shape: f32[2,2], index: 21, kind: output, shape index: {0}]   ;;  %s5441_s22 = inlined_call_operand.hbm [shape: f32[1,1], index: 22, kind: output, shape index: {1}]  }
   0x1   :  { %5450 = sst [smem:[#allocation10_spill]] %s5419_s0 }
   0x2   :  { %5451 = sst [smem:[#allocation11_spill]] %s5420_s1 }
   0x3   :  { %5452 = sst [smem:[#allocation12_spill]] %s5421_s2 }
   0x4   :  { %5453 = sst [smem:[#allocation13_spill]] %s5422_s3 }
   0x5   :  { %5454 = sst [smem:[#allocation14_spill]] %s5423_s4 }
   0x6   :  { %5455 = sst [smem:[#allocation15_spill]] %s5424_s5 }
   0x7   :  { %5456 = sst [smem:[#allocation16_spill]] %s5425_s6 }
   0x8   :  { %5457 = sst [smem:[#allocation17_spill]] %s5428_s9 }
   0x9   :  { %5458 = sst [smem:[#allocation18_spill]] %s5429_s10 }
   0xa   :  { %5459 = sst [smem:[#allocation19_spill]] %s5430_s11 }
   0xb   :  { %5460 = sst [smem:[#allocation20_spill]] %s5431_s12 }
   0xc   :  { %5461 = sst [smem:[#allocation21_spill]] %s5432_s13 }
   0xd   :  { %5462 = sst [smem:[#allocation22_spill]] %s5439_s20 }
   0xe   :  { %5463 = sst [smem:[#allocation23_spill]] %s5440_s21 }
   0xf   :  { %5464 = sst [smem:[#allocation24_spill]] %s5441_s22 }
  0x10   :  { %28 = vsyncpa [#allocation4], 0 }
  0x11   :  { %29 = vsyncpa [#allocation6], 0  ;;  %s4820_s3 = smov 0  }
  0x12 LB: > { %5465 = sst [smem:[#allocation9_spill]] %s4692_s3  ;;  %s4826_s28 = sadd.s32 4294967295, %s4692_s3   ;;  %s4692_s3 = sphi %s4820_s3, %s35_s3  }
  0x13   : > { %p3928_p0 = scmp.ge.s32.totalorder %s4692_s3, 1  ;;  %p684_p1 = scmp.lt.s32.totalorder %s4692_s3, 3 }
  0x15   : > { %p685_p2 = pnand %p3928_p0, %p684_p1 }
  0x16   : > { %p778_p3 = scmp.lt.s32.totalorder (!%p685_p2), %s4826_s28, 1  ;;  %s5466_s9 = sld [smem:[#allocation17_spill]] (!%p685_p2) }
  0x17   : > { %688 = sbr.rel (%p685_p2) target bundleno = 3675 (0xe5b), region = 104  ;;  %s5467_s10 = sld [smem:[#allocation18_spill]] (!%p685_p2) }
  0x18   : > { %s5468_s11 = sld [smem:[#allocation19_spill]] (!%p685_p2)  ;;  %s5469_s12 = sld [smem:[#allocation20_spill]] (!%p685_p2) }
  0x19   : > { %s5470_s13 = sld [smem:[#allocation21_spill]] (!%p685_p2)  ;;  %p3943_p4 = scmp.ne.s32.totalorder (!%p685_p2), %s4826_s28, 0 }
  0x1e   : > { %s4832_s29 = scalar_select %p778_p3, %s4826_s28, 1 }
  0x1f   : > { %s5471_s5 = sld [smem:[#allocation11_spill]] (!%p3943_p4)  ;;  %v4694_v2 = vmov (!%p3943_p4), 0   ;;  %s5472_s3 = sld [smem:[#allocation12_spill]] (!%p3943_p4)  ;;  %v827_v30 = vlaneseq (!%p3943_p4)  ;;  %vm872_vm0 = vcmask (!%p3943_p4), 64512   ;;  %v4695_v34 = vmov (!%p3943_p4), 0.0  }
  0x20   : > { %s4075_s30 = sshll.u32 %s4832_s29, 6  ;;  %s4078_s4 = sshll.u32 %s4832_s29, 4  ;;  %4537 = vset.pattern.permute.xlu1 (!%p3943_p4), %v4694_v2  ;;  %4536 = vset.pattern.permute.xlu0 (!%p3943_p4), %v4694_v2  ;;  %v4696_v39 = vmov (!%p3943_p4), 1.0   ;;  %vm1035_vm5 = vcmask (!%p3943_p4), 261120  }
  0x21   : > { %s4839_s1 = scalar_lea.vmem %s5466_s9, %s4075_s30  ;;  %s4844_s6 = scalar_lea.vmem %s5467_s10, %s4075_s30  ;;  %v828_v31 = vand.u32 (!%p3943_p4), 127, %v827_v30 }
  0x22   : > { %s4849_s2 = scalar_lea.vmem %s5468_s11, %s4075_s30  ;;  %s4854_s22 = scalar_lea.vmem %s5469_s12, %s4078_s4 }
  0x23   : > { %s4859_s0 = scalar_lea.vmem %s5470_s13, %s4078_s4  ;;  %s4080_s23 = sshll.u32 %s4832_s29, 5 }
  0x24   : > { %s4865_s24 = scalar_lea.vmem %s5433_s14, %s4080_s23  ;;  %s4502_s10 = smul.u32 12, %s4832_s29 }
  0x25   : > { %s3942_s25 = sshll.u32 %s4832_s29, 3  ;;  %824 = sbr.rel (%p3943_p4) target bundleno = 711 (0x2c7), region = 108  ;;  %v842_v0 = vld [vmem:[%s5471_s5 + $0x8] sm:$0xff] (!%p3943_p4)  ;;  %v841_v1 = vld [vmem:[%s5471_s5] sm:$0xff] (!%p3943_p4) }
  0x26   : > { %s4876_s12 = scalar_lea.vmem %s5434_s15, %s4502_s10  ;;  %s4881_s4 = scalar_lea.vmem %s5435_s16, %s3942_s25  ;;  %v855_v3 = vld [vmem:[%s5472_s3] sm:$0xff] (!%p3943_p4)  ;;  %847 = vperm.xlu1 (!%p3943_p4), %4537, %v842_v0   ;;  %844 = vperm.xlu0 (!%p3943_p4), %4536, %v841_v1  }
  0x27   : > { %s5473_s27 = smov (!%p3943_p4), %s5472_s3  ;;  %s5474_s23 = sld [smem:[#allocation10_spill]] (!%p3943_p4) }
  0x28   : > { %v856_v4 = vld [vmem:[%s5473_s27 + $0x8] sm:$0xff] (!%p3943_p4)  ;;  %v857_v7 = vld [vmem:[%s5473_s27 + $0x10] sm:$0xff] (!%p3943_p4)  ;;  %v858_v8 = vld [vmem:[%s5473_s27 + $0x18] sm:$0xff] (!%p3943_p4)  ;;  %s5475_s9 = sld [smem:[#allocation13_spill]] (!%p3943_p4)  ;;  %s5476_s13 = sld [smem:[#allocation14_spill]] (!%p3943_p4) }
  0x29   : > { %v4462_v6 = vpack.c.bf16 (!%p3943_p4), %v856_v4, %v855_v3  ;;  %v4466_v10 = vpack.c.bf16 (!%p3943_p4), %v858_v8, %v857_v7  ;;  %v859_v11 = vld [vmem:[%s5473_s27 + $0x20] sm:$0xff] (!%p3943_p4)  ;;  %v860_v12 = vld [vmem:[%s5473_s27 + $0x28] sm:$0xff] (!%p3943_p4)  ;;  %v861_v15 = vld [vmem:[%s5473_s27 + $0x30] sm:$0xff] (!%p3943_p4)  ;;  %s5477_s25 = sld [smem:[#allocation15_spill]] (!%p3943_p4)  ;;  %s5478_s11 = sld [smem:[#allocation16_spill]] (!%p3943_p4) }
  0x2a   : > { %v4470_v13 = vpack.c.bf16 (!%p3943_p4), %v860_v12, %v859_v11  ;;  %v862_v16 = vld [vmem:[%s5473_s27 + $0x38] sm:$0xff] (!%p3943_p4)  ;;  %v863_v18 = vld [vmem:[%s5473_s27 + $0x40] sm:$0xff] (!%p3943_p4)  ;;  %v864_v19 = vld [vmem:[%s5473_s27 + $0x48] sm:$0xff] (!%p3943_p4) }
  0x2b   : > { %4463 = vmatprep.subr.bf16.mxu0 (!%p3943_p4), %v4462_v6  ;;  %v4474_v17 = vpack.c.bf16 (!%p3943_p4), %v862_v16, %v861_v15  ;;  %v4478_v20 = vpack.c.bf16 (!%p3943_p4), %v864_v19, %v863_v18  ;;  %v865_v21 = vld [vmem:[%s5473_s27 + $0x50] sm:$0xff] (!%p3943_p4)  ;;  %v866_v22 = vld [vmem:[%s5473_s27 + $0x58] sm:$0xff] (!%p3943_p4)  ;;  %v867_v24 = vld [vmem:[%s5473_s27 + $0x60] sm:$0xff] (!%p3943_p4) }
  0x2c   : > { %4465 = vmatpush3.bf16.msra.mxu0 %v4462_v6  ;;  %v4482_v23 = vpack.c.bf16 %v866_v22, %v865_v21  ;;  %v868_v25 = vld [vmem:[%s5473_s27 + $0x68] sm:$0xff]  ;;  %v869_v27 = vld [vmem:[%s5473_s27 + $0x70] sm:$0xff]  ;;  %v870_v28 = vld [vmem:[%s5473_s27 + $0x78] sm:$0xff] }
  0x2d   : > { %v826_v5 = vld [vmem:[%s5474_s23 + $0x8] sm:$0xff]  ;;  %v825_v9 = vld [vmem:[%s5474_s23] sm:$0xff]  ;;  %4467 = vmatprep.subr.bf16.mxu0 %v4466_v10  ;;  %v4486_v26 = vpack.c.bf16 %v868_v25, %v867_v24  ;;  %v4490_v29 = vpack.c.bf16 %v870_v28, %v869_v27 }
  0x2e   : > { %833 = vperm.xlu1 %4537, %v826_v5   ;;  %830 = vperm.xlu0 %4536, %v825_v9   ;;  %v871_v14 = vld [vmem:[%s5475_s9] sm:$0xff]  ;;  %v1030_v43 = vld [vmem:[%s5476_s13 + $0x8] sm:$0xff] }
  0x2f   : > { %4191 = vmatprep.subr.mxu1 %v871_v14  ;;  %v1029_v46 = vld [vmem:[%s5476_s13] sm:$0xff] }
  0x30   : > { %4192 = vmatpush3.msra.mxu1 %v871_v14  ;;  %4469 = vmatpush3.bf16.msra.mxu0 %v4466_v10  ;;  %v3952_v5 = vld [vmem:[%s5477_s25] ss:$0 sm:$0xff] }
  0x31   : > { %4471 = vmatprep.subr.bf16.mxu0 %v4470_v13  ;;  %v3953_v7 = vld [vmem:[%s5478_s11] ss:$0 sm:$0xff] }
  0x34   : > { %4473 = vmatpush3.bf16.msra.mxu0 %v4470_v13 }
  0x35   : > { %4475 = vmatprep.subr.bf16.mxu0 %v4474_v17 }
  0x38   : > { %4477 = vmatpush3.bf16.msra.mxu0 %v4474_v17 }
  0x39   : > { %4479 = vmatprep.subr.bf16.mxu0 %v4478_v20 }
  0x3c   : > { %4481 = vmatpush3.bf16.msra.mxu0 %v4478_v20 }
  0x3d   : > { %4483 = vmatprep.subr.bf16.mxu0 %v4482_v23 }
  0x40   : > { %4485 = vmatpush3.bf16.msra.mxu0 %v4482_v23 }
  0x41   : > { %4487 = vmatprep.subr.bf16.mxu0 %v4486_v26 }
  0x44   : > { %4489 = vmatpush3.bf16.msra.mxu0 %v4486_v26 }
  0x45   : > { %4491 = vmatprep.subr.bf16.mxu0 %v4490_v29 }
  0x48   : > { %4493 = vmatpush3.bf16.msra.mxu0 %v4490_v29 }
  0xa5   : > { %v848_v32 = vpop.permute.xlu1 %847  ;;  %v845_v33 = vpop.permute.xlu0 %844 }
  0xa6   : > { %vm850_vm1 = vcmp.eq.s32.totalorder %v848_v32, %v828_v31  ;;  %vm849_vm2 = vcmp.eq.s32.totalorder %v845_v33, %v828_v31 }
  0xa7   : > { %v3947_v35 = vsel %vm850_vm1, 1.0, %v4695_v34  ;;  %v3946_v36 = vsel %vm849_vm2, 1.0, %v4695_v34 }
  0xa8   : > { %4193 = vmatprep.mubr.msk.f32.mxu1 %vm872_vm0, %v3946_v36 }
  0xa9   : > { %4194 = vmatmul.mubr.msk.f32.vlgmr.msra.gmra.mrb[0].mxu1 %vm872_vm0, %v3947_v35 }
  0xad   : > { %v834_v37 = vpop.permute.xlu1 %833  ;;  %v831_v38 = vpop.permute.xlu0 %830 }
  0xae   : > { %vm836_vm3 = vcmp.eq.s32.totalorder %v834_v37, %v828_v31  ;;  %vm835_vm4 = vcmp.eq.s32.totalorder %v831_v38, %v828_v31 }
  0xaf   : > { %4228 = vmatprep.mubr.msk.f32.mxu0 %vm835_vm4, %v4696_v39 }
  0xb0   : > { %4229 = vmatmul.mubr.msk.f32.vlgmr.msra.gmra.mrb[0].mxu0 %vm836_vm3, %v4696_v39 }
 0x17c   : > { %v4195_v40 = vpop.f32.mrb[0].mxu1 }
 0x17d   : > { %v945_v41 = vpop.f32.mrb[1].mxu1 }
 0x183   : > { %v4230_v42 = vpop.f32.mrb[0].mxu0 }
 0x184   : > { %v1026_v44 = vadd.f32 %v4230_v42, %v4195_v40  ;;  %v1020_v45 = vpop.f32.mrb[1].mxu0 }
 0x185   : > { %v1021_v47 = vadd.f32 %v1020_v45, %v945_v41 }
 0x186   : > { %v1032_v48 = vadd.f32 %v1030_v43, %v1026_v44 }
 0x187   : > { %v1031_v49 = vadd.f32 %v1029_v46, %v1021_v47 }
 0x188   : > { %v1039_v50 = vsel %vm1035_vm5, %v1032_v48, 0.0 }
 0x189   : > { %1040 = vadd.xlane.f32.xlu1 %v1039_v50  ;;  %v1036_v51 = vsel %vm1035_vm5, %v1031_v49, 0.0 }
 0x18a   : > { %1037 = vadd.xlane.f32.xlu0 %v1036_v51 }
 0x216   : > { %v1041_v52 = vpop.xlane.xlu1 %1040 }
 0x217   : > { %v1044_v53 = vmul.f32 0.03125, %v1041_v52  ;;  %v1038_v54 = vpop.xlane.xlu0 %1037 }
 0x218   : > { %v1043_v55 = vmul.f32 0.03125, %v1038_v54 }
 0x219   : > { %v1046_v56 = vsub.f32 %v1032_v48, %v1044_v53 }
 0x21a   : > { %v1045_v57 = vsub.f32 %v1031_v49, %v1043_v55 }
 0x21b   : > { %v1048_v60 = vmul.f32 %v1046_v56, %v1046_v56 }
 0x21c   : > { %v1047_v58 = vmul.f32 %v1045_v57, %v1045_v57 }
 0x21d   : > { %v1052_v61 = vsel %vm1035_vm5, %v1048_v60, 0.0 }
 0x21e   : > { %v1049_v59 = vsel %vm1035_vm5, %v1047_v58, 0.0 }
 0x21f   : > { %1050 = vadd.xlane.f32.xlu0 %v1049_v59 }
 0x223   : > { %1053 = vadd.xlane.f32.xlu0 %v1052_v61 }
 0x2ac   : > { %v1051_v62 = vpop.xlane.xlu0 %1050 }
 0x2ad   : > { %v1055_v63 = vmul.f32 0.03125, %v1051_v62 }
 0x2af   : > { %v1057_v0 = vadd.f32 1e-12, %v1055_v63 }
 0x2b0   : > { %v1054_v1 = vpop.xlane.xlu0 %1053 }
 0x2b1   : > { %4538 = vrsqrt.f32 %v1057_v0  ;;  %v1056_v2 = vmul.f32 0.03125, %v1054_v1 }
 0x2b3   : > { %v1058_v3 = vadd.f32 1e-12, %v1056_v2 }
 0x2b5   : > { %4540 = vrsqrt.f32 %v1058_v3 }
 0x2bb   : > { %v4539_v4 = vpop.eup %4538 }
 0x2bc   : > { %v1061_v6 = vmul.f32 %v4539_v4, %v1045_v57 }
 0x2be   : > { %v1069_v8 = vmul.f32 %v3952_v5, %v1061_v6 }
 0x2bf   : > { %v4541_v9 = vpop.eup %4540 }
 0x2c0   : > { %v1077_v10 = vadd.f32 %v3953_v7, %v1069_v8  ;;  %v1062_v11 = vmul.f32 %v4541_v9, %v1046_v56 }
 0x2c2   : > { %1079 = vst.msk [vmem:[#allocation2] sm:$0xff] %vm1035_vm5, %v1077_v10  ;;  %v1070_v12 = vmul.f32 %v3952_v5, %v1062_v11 }
 0x2c4   : > { %v1078_v13 = vadd.f32 %v3953_v7, %v1070_v12 }
 0x2c6   : > { %1080 = vst.msk [vmem:[#allocation2 + $0x8] sm:$0xff] %vm1035_vm5, %v1078_v13 }
 0x2c7 PF: > { %v4542_v14 = vld [vmem:[%s4839_s1] sm:$0xff]   ;;  %v4697_v15 = vmov 0.0   ;;  %v4544_v17 = vld [vmem:[%s4839_s1 + $0x8] sm:$0xff]   ;;  %vm4698_vm6 = vmmov 0   ;;  %vm1108_vm7 = vcmask 261120   ;;  %v4547_v23 = vld [vmem:[%s4839_s1 + $0x10] sm:$0xff]   ;;  %v1092_v42 = vlaneseq }
 0x2c8   : > { %4231 = vmatprep.subr.bf16.mxu0 %v4697_v15  ;;  %4239 = vmatprep.subr.bf16.mxu1 %v4697_v15  ;;  %v4543_v16 = vld [vmem:[%s4844_s6] sm:$0xff]   ;;  %v4545_v18 = vld [vmem:[%s4844_s6 + $0x8] sm:$0xff]   ;;  %v4549_v25 = vld [vmem:[%s4839_s1 + $0x18] sm:$0xff]   ;;  %vm1841_vm8 = vcmask 64512   ;;  %vm3127_vm9 = vcmask 1043456   ;;  %vm3498_vm10 = vcmask 523264  }
 0x2c9   : > { %4232 = vmatpush3.bf16.msra.mxu0 %v4542_v14  ;;  %4235 = vmatprep.mubr.msk.bf16.mxu0 %vm4698_vm6, %v4697_v15  ;;  %v4977_v19 = vld [vmem:[#allocation2] sm:$0xff]  ;;  %v4548_v24 = vld [vmem:[%s4849_s2 + $0x8] sm:$0xff]   ;;  %v4550_v26 = vld [vmem:[%s4844_s6 + $0x10] sm:$0xff]   ;;  %v5075_v43 = vshrl.u32 %v1092_v42, 7  ;;  %p4066_p5 = scmp.ne.s32.totalorder %s4826_s28, 1 }
 0x2ca   : > { %4240 = vmatpush3.bf16.msra.mxu1 %v4543_v16  ;;  %4233 = vmatprep.subr.bf16.mxu0 %v4697_v15  ;;  %v4546_v22 = vld [vmem:[%s4849_s2] sm:$0xff]   ;;  %v4551_v27 = vld [vmem:[%s4849_s2 + $0x10] sm:$0xff]   ;;  %v4552_v28 = vld [vmem:[%s4844_s6 + $0x18] sm:$0xff]   ;;  %vm3617_vm11 = vcmask (!%p4066_p5), 7168   ;;  %vm4701_vm12 = vmmov (!%p4066_p5), 0   ;;  %vm3661_vm13 = vcmask (!%p4066_p5), 1041409  }
 0x2cb   : > { %4241 = vmatprep.subr.bf16.mxu1 %v4697_v15  ;;  %4243 = vmatprep.mubr.msk.bf16.mxu1 %vm4698_vm6, %v4697_v15  ;;  %v4553_v29 = vld [vmem:[%s4849_s2 + $0x18] sm:$0xff]   ;;  %v4554_v30 = vld [vmem:[%s4839_s1 + $0x20] sm:$0xff]   ;;  %v4556_v32 = vld [vmem:[%s4839_s1 + $0x28] sm:$0xff]   ;;  %v5078_v44 = vsub.s32 0, %v5075_v43  ;;  %v5099_v63 = vsub.s32 1, %v5075_v43  ;;  %v5114_v16 = vsub.s32 2, %v5075_v43 }
 0x2cc   : > { %v4555_v31 = vld [vmem:[%s4844_s6 + $0x20] sm:$0xff]   ;;  %v4557_v33 = vld [vmem:[%s4844_s6 + $0x28] sm:$0xff]   ;;  %v4561_v35 = vld [vmem:[%s4839_s1 + $0x30] sm:$0xff]   ;;  %vm3735_vm14 = vcmask (!%p4066_p5), 9216   ;;  %vm3762_vm15 = vcmask (!%p4066_p5), 0  }
 0x2cd   : > { %v4979_v20 = vld [vmem:[#allocation2 + $0x8] sm:$0xff]  ;;  %4234 = vmatpush3.bf16.msra.mxu0 %v4544_v17  ;;  %v4558_v34 = vld [vmem:[%s4849_s2 + $0x20] sm:$0xff]   ;;  %v4563_v37 = vld [vmem:[%s4839_s1 + $0x38] sm:$0xff]  }
 0x2ce   : > { %v4983_v21 = vpack.c.bf16 %v4979_v20, %v4977_v19  ;;  %4242 = vmatpush3.bf16.msra.mxu1 %v4545_v18  ;;  %4247 = vmatprep.subr.bf16.mxu0 %v4697_v15  ;;  %v4559_v36 = vld [vmem:[%s4849_s2 + $0x28] sm:$0xff]   ;;  %v4560_v38 = vld [vmem:[%s4844_s6 + $0x30] sm:$0xff]   ;;  %v4562_v39 = vld [vmem:[%s4844_s6 + $0x38] sm:$0xff]  }
 0x2cf   : > { %4255 = vmatprep.subr.bf16.mxu1 %v4697_v15  ;;  %v4564_v40 = vld [vmem:[%s4849_s2 + $0x30] sm:$0xff]   ;;  %v4565_v41 = vld [vmem:[%s4849_s2 + $0x38] sm:$0xff]   ;;  %v5081_v45 = vld [vmem:[%s4876_s12 + $0x4] sm:$0xf] }
 0x2d0   : > { %4236 = vmatmul.mubr.msk.bf16.vlgmr.msra.gmra.mrb[0].mxu0 %vm1108_vm7, %v4983_v21  ;;  %v5084_v46 = vld [vmem:[%s4876_s12] sm:$0xf]  ;;  %v1160_v47 = vrot.slane %v5081_v45, %v5078_v44  ;;  %v1345_v6 = vrot.slane %v5081_v45, %v5099_v63 }
 0x2d1   : > { %4244 = vmatmul.mubr.msk.bf16.vlgmr.msra.gmra.mrb[0].mxu1 %vm1108_vm7, %v4983_v21  ;;  %4248 = vmatpush3.bf16.msra.mxu0 %v4546_v22  ;;  %v1095_v49 = vrot.slane %v5084_v46, %v5078_v44  ;;  %v1283_v7 = vrot.slane %v5084_v46, %v5099_v63 }
 0x2d2   : > { %4256 = vmatpush3.bf16.msra.mxu1 %v4547_v23  ;;  %4249 = vmatprep.subr.bf16.mxu0 %v4697_v15 }
 0x2d3   : > { %4257 = vmatprep.subr.bf16.mxu1 %v4697_v15  ;;  %4251 = vmatprep.mubr.msk.bf16.mxu0 %vm4698_vm6, %v4697_v15 }
 0x2d4   : > { %4259 = vmatprep.mubr.msk.bf16.mxu1 %vm4698_vm6, %v4697_v15 }
 0x2d5   : > { %4250 = vmatpush3.bf16.msra.mxu0 %v4548_v24  ;;  %v1531_v24 = vrot.slane %v5081_v45, %v5114_v16 }
 0x2d6   : > { %4258 = vmatpush3.bf16.msra.mxu1 %v4549_v25  ;;  %4263 = vmatprep.subr.bf16.mxu0 %v4697_v15 }
 0x2d7   : > { %4271 = vmatprep.subr.bf16.mxu1 %v4697_v15 }
 0x2d8   : > { %4252 = vmatmul.mubr.msk.bf16.vlgmr.msra.gmra.mrb[4].mxu0 %vm1108_vm7, %v4983_v21 }
 0x2d9   : > { %4260 = vmatmul.mubr.msk.bf16.vlgmr.msra.gmra.mrb[4].mxu1 %vm1108_vm7, %v4983_v21  ;;  %4264 = vmatpush3.bf16.msra.mxu0 %v4550_v26  ;;  %v1469_v26 = vrot.slane %v5084_v46, %v5114_v16 }
 0x2da   : > { %4272 = vmatpush3.bf16.msra.mxu1 %v4551_v27  ;;  %4265 = vmatprep.subr.bf16.mxu0 %v4697_v15 }
 0x2db   : > { %4273 = vmatprep.subr.bf16.mxu1 %v4697_v15  ;;  %4267 = vmatprep.mubr.msk.bf16.mxu0 %vm4698_vm6, %v4697_v15 }
 0x2dc   : > { %4275 = vmatprep.mubr.msk.bf16.mxu1 %vm4698_vm6, %v4697_v15 }
 0x2dd   : > { %4266 = vmatpush3.bf16.msra.mxu0 %v4552_v28 }
 0x2de   : > { %4274 = vmatpush3.bf16.msra.mxu1 %v4553_v29  ;;  %4279 = vmatprep.subr.bf16.mxu0 %v4697_v15 }
 0x2df   : > { %4287 = vmatprep.subr.bf16.mxu1 %v4697_v15 }
 0x2e0   : > { %4268 = vmatmul.mubr.msk.bf16.vlgmr.msra.gmra.mrb[8].mxu0 %vm1108_vm7, %v4983_v21 }
 0x2e1   : > { %4276 = vmatmul.mubr.msk.bf16.vlgmr.msra.gmra.mrb[8].mxu1 %vm1108_vm7, %v4983_v21  ;;  %4280 = vmatpush3.bf16.msra.mxu0 %v4554_v30 }
 0x2e2   : > { %4288 = vmatpush3.bf16.msra.mxu1 %v4555_v31  ;;  %4281 = vmatprep.subr.bf16.mxu0 %v4697_v15 }
 0x2e3   : > { %4289 = vmatprep.subr.bf16.mxu1 %v4697_v15  ;;  %4283 = vmatprep.mubr.msk.bf16.mxu0 %vm4698_vm6, %v4697_v15 }
 0x2e4   : > { %4291 = vmatprep.mubr.msk.bf16.mxu1 %vm4698_vm6, %v4697_v15 }
 0x2e5   : > { %4282 = vmatpush3.bf16.msra.mxu0 %v4556_v32 }
 0x2e6   : > { %4290 = vmatpush3.bf16.msra.mxu1 %v4557_v33  ;;  %4295 = vmatprep.subr.bf16.mxu0 %v4697_v15 }
 0x2e7   : > { %4303 = vmatprep.subr.bf16.mxu1 %v4697_v15 }
 0x2e8   : > { %4284 = vmatmul.mubr.msk.bf16.vlgmr.msra.gmra.mrb[12].mxu0 %vm1108_vm7, %v4983_v21 }
 0x2e9   : > { %4292 = vmatmul.mubr.msk.bf16.vlgmr.msra.gmra.mrb[12].mxu1 %vm1108_vm7, %v4983_v21  ;;  %4296 = vmatpush3.bf16.msra.mxu0 %v4558_v34 }
 0x2ea   : > { %4297 = vmatprep.subr.bf16.mxu0 %v4697_v15  ;;  %4299 = vmatprep.mubr.msk.bf16.mxu0 %vm4698_vm6, %v4697_v15 }
 0x2eb   : > { %4304 = vmatpush3.bf16.msra.mxu1 %v4561_v35  ;;  %4307 = vmatprep.mubr.msk.bf16.mxu1 %vm4698_vm6, %v4697_v15 }
 0x2ec   : > { %4305 = vmatprep.subr.bf16.mxu1 %v4697_v15 }
 0x2ed   : > { %4298 = vmatpush3.bf16.msra.mxu0 %v4559_v36 }
 0x2ee   : > { %4311 = vmatprep.subr.bf16.mxu0 %v4697_v15 }
 0x2ef   : > { %4306 = vmatpush3.bf16.msra.mxu1 %v4563_v37 }
 0x2f0   : > { %4300 = vmatmul.mubr.msk.bf16.vlgmr.msra.gmra.mrb[16].mxu0 %vm1108_vm7, %v4983_v21  ;;  %4319 = vmatprep.subr.bf16.mxu1 %v4697_v15 }
 0x2f1   : > { %4312 = vmatpush3.bf16.msra.mxu0 %v4560_v38  ;;  %4315 = vmatprep.mubr.msk.bf16.mxu0 %vm4698_vm6, %v4697_v15 }
 0x2f2   : > { %4313 = vmatprep.subr.bf16.mxu0 %v4697_v15  ;;  %4308 = vmatmul.mubr.msk.bf16.vlgmr.msra.gmra.mrb[16].mxu1 %vm1108_vm7, %v4983_v21 }
 0x2f3   : > { %4323 = vmatprep.mubr.msk.bf16.mxu1 %vm4698_vm6, %v4697_v15  ;;  %4320 = vmatpush3.bf16.msra.mxu1 %v4564_v40  ;;  %v5143_v40 = vsub.s32 3, %v5075_v43 }
 0x2f4   : > { %4321 = vmatprep.subr.bf16.mxu1 %v4697_v15 }
 0x2f5   : > { %4314 = vmatpush3.bf16.msra.mxu0 %v4562_v39 }
 0x2f6   : > { %4327 = vmatprep.subr.mxu0 %v4697_v15 }
 0x2f7   : > { %4322 = vmatpush3.bf16.msra.mxu1 %v4565_v41 }
 0x2f8   : > { %4316 = vmatmul.mubr.msk.bf16.vlgmr.msra.gmra.mrb[20].mxu0 %vm1108_vm7, %v4983_v21  ;;  %4342 = vmatprep.subr.mxu1 %v4697_v15 }
 0x2f9   : > { %4329 = vmatprep.mubr.msk.f32.mxu0 %vm4698_vm6, %v4697_v15 }
 0x2fa   : > { %4324 = vmatmul.mubr.msk.bf16.vlgmr.msra.gmra.mrb[20].mxu1 %vm1108_vm7, %v4983_v21 }
 0x2fb   : > { %4344 = vmatprep.mubr.msk.f32.mxu1 %vm4698_vm6, %v4697_v15 }
 0x3a3   : > { %v1146_v48 = vpop.f32.mrb[0].mxu0 }
 0x3a4   : > { %v1207_v50 = vpop.f32.mrb[0].mxu1  ;;  %v4237_v51 = vpop.f32.mrb[1].mxu0  ;;  %v1147_v59 = vadd.f32 %v1146_v48, %v1095_v49 }
 0x3a5   : > { %v1208_v52 = vadd.f32 %v1207_v50, %v1160_v47  ;;  %v1149_v53 = vpop.f32.mrb[2].mxu0  ;;  %v4245_v54 = vpop.f32.mrb[1].mxu1  ;;  %v1717_v50 = vrot.slane %v5081_v45, %v5143_v40 }
 0x3a6   : > { %v4238_v55 = vpop.f32.mrb[3].mxu0  ;;  %v1210_v56 = vpop.f32.mrb[2].mxu1  ;;  %v1150_v61 = vadd.f32 %v1149_v53, %v1095_v49  ;;  %v1655_v53 = vrot.slane %v5084_v46, %v5143_v40 }
 0x3a7   : > { %4328 = vmatpush3.xpose.msk.msra.mxu0 %vm1841_vm8, %v1208_v52  ;;  %v1211_v57 = vadd.f32 %v1210_v56, %v1160_v47  ;;  %v4246_v58 = vpop.f32.mrb[3].mxu1  ;;  %v5152_v52 = vld [vmem:[%s4876_s12 + $0x8] sm:$0xf] }
 0x3a8   : > { %4332 = vmatprep.subr.mxu0 %v4697_v15  ;;  %v1221_v55 = vrot.slane %v5152_v52, %v5078_v44 }
 0x3aa   : > { %4330 = vmatmul.mubr.msk.f32.vlgmr.msra.gmra.mrb[24].mxu0 %vm1841_vm8, %v1147_v59 }
 0x3ab   : > { %4333 = vmatpush3.xpose.msk.msra.mxu0 %vm1841_vm8, %v1211_v57  ;;  %v5094_v60 = vpop.f32.mrb[4].mxu0  ;;  %4334 = vmatprep.mubr.msk.f32.mxu0 %vm4698_vm6, %v4697_v15 }
 0x3ac   : > { %v4253_v62 = vpop.f32.mrb[5].mxu0  ;;  %v1330_v0 = vpop.f32.mrb[4].mxu1  ;;  %4337 = vmatprep.subr.mxu0 %v4697_v15  ;;  %v1269_v45 = vadd.f32 %v5094_v60, %v1221_v55 }
 0x3ad   : > { %v5102_v1 = vpop.f32.mrb[6].mxu0  ;;  %v4261_v2 = vpop.f32.mrb[5].mxu1  ;;  %v1331_v12 = vadd.f32 %v1330_v0, %v1283_v7 }
 0x3ae   : > { %4335 = vmatmul.mubr.msk.f32.vlgmr.msra.gmra.mrb[26].mxu0 %vm1841_vm8, %v1150_v61  ;;  %v4254_v3 = vpop.f32.mrb[7].mxu0  ;;  %v1333_v4 = vpop.f32.mrb[6].mxu1  ;;  %v1272_v46 = vadd.f32 %v5102_v1, %v1221_v55 }
 0x3af   : > { %v4262_v5 = vpop.f32.mrb[7].mxu1  ;;  %4339 = vmatprep.mubr.msk.f32.mxu0 %vm4698_vm6, %v4697_v15  ;;  %v1334_v23 = vadd.f32 %v1333_v4, %v1283_v7  ;;  %v1833_v4 = vld [vmem:[%s5426_s7] sm:$0xff] }
 0x3b3   : > { %v1392_v8 = vpop.f32.mrb[8].mxu0 }
 0x3b4   : > { %v1393_v9 = vadd.f32 %v1392_v8, %v1345_v6  ;;  %v4269_v10 = vpop.f32.mrb[9].mxu0  ;;  %v5111_v11 = vpop.f32.mrb[8].mxu1  ;;  %v1834_v8 = vld [vmem:[%s5426_s7 + $0x8] sm:$0xff] }
 0x3b5   : > { %v1395_v13 = vpop.f32.mrb[10].mxu0  ;;  %v4277_v14 = vpop.f32.mrb[9].mxu1 }
 0x3b6   : > { %v1396_v17 = vadd.f32 %v1395_v13, %v1345_v6  ;;  %v4270_v18 = vpop.f32.mrb[11].mxu0  ;;  %4338 = vmatpush3.xpose.msk.msra.mxu0 %vm1841_vm8, %v1393_v9  ;;  %v5117_v21 = vpop.f32.mrb[10].mxu1 }
 0x3b7   : > { %v4278_v22 = vpop.f32.mrb[11].mxu1  ;;  %4347 = vmatprep.subr.mxu0 %v4697_v15 }
 0x3b8   : > { %4343 = vmatpush3.xpose.msk.msra.mxu1 %vm1841_vm8, %v1396_v17  ;;  %v1835_v17 = vld [vmem:[%s5426_s7 + $0x10] sm:$0xff]  ;;  %v1836_v22 = vld [vmem:[%s5426_s7 + $0x18] sm:$0xff] }
 0x3b9   : > { %4340 = vmatmul.mubr.msk.f32.vlgmr.msra.gmra.mrb[28].mxu0 %vm1841_vm8, %v1331_v12  ;;  %4352 = vmatprep.subr.mxu1 %v4697_v15 }
 0x3ba   : > { %4349 = vmatprep.mubr.msk.f32.mxu0 %vm4698_vm6, %v4697_v15 }
 0x3bb   : > { %v1516_v25 = vpop.f32.mrb[12].mxu0  ;;  %4345 = vmatmul.mubr.msk.f32.vlgmr.msra.gmra.mrb[24].mxu1 %vm1841_vm8, %v1334_v23 }
 0x3bc   : > { %v1578_v27 = vpop.f32.mrb[12].mxu1  ;;  %v4285_v28 = vpop.f32.mrb[13].mxu0  ;;  %4354 = vmatprep.mubr.msk.f32.mxu1 %vm4698_vm6, %v4697_v15  ;;  %v1517_v36 = vadd.f32 %v1516_v25, %v1469_v26 }
 0x3bd   : > { %v1579_v29 = vadd.f32 %v1578_v27, %v1531_v24  ;;  %v4293_v30 = vpop.f32.mrb[13].mxu1  ;;  %v1519_v31 = vpop.f32.mrb[14].mxu0 }
 0x3be   : > { %v1581_v32 = vpop.f32.mrb[14].mxu1  ;;  %v4286_v33 = vpop.f32.mrb[15].mxu0  ;;  %v1520_v37 = vadd.f32 %v1519_v31, %v1469_v26  ;;  %v1837_v30 = vld [vmem:[%s5426_s7 + $0x20] sm:$0xff] }
 0x3bf   : > { %v1582_v34 = vadd.f32 %v1581_v32, %v1531_v24  ;;  %4348 = vmatpush3.xpose.msk.msra.mxu0 %vm1841_vm8, %v1579_v29  ;;  %v4294_v35 = vpop.f32.mrb[15].mxu1  ;;  %v1838_v32 = vld [vmem:[%s5426_s7 + $0x28] sm:$0xff] }
 0x3c0   : > { %4357 = vmatprep.subr.mxu0 %v4697_v15 }
 0x3c1   : > { %4353 = vmatpush3.xpose.msk.msra.mxu1 %vm1841_vm8, %v1582_v34 }
 0x3c2   : > { %4350 = vmatmul.mubr.msk.f32.vlgmr.msra.gmra.mrb[30].mxu0 %vm1841_vm8, %v1517_v36  ;;  %4362 = vmatprep.subr.mxu1 %v4697_v15 }
 0x3c3   : > { %v5137_v38 = vpop.f32.mrb[16].mxu0  ;;  %4359 = vmatprep.mubr.msk.f32.mxu0 %vm4698_vm6, %v4697_v15 }
 0x3c4   : > { %4355 = vmatmul.mubr.msk.f32.vlgmr.msra.gmra.mrb[26].mxu1 %vm1841_vm8, %v1520_v37  ;;  %v4301_v39 = vpop.f32.mrb[17].mxu0 }
 0x3c5   : > { %v5145_v41 = vpop.f32.mrb[18].mxu0  ;;  %v1702_v42 = vpop.f32.mrb[16].mxu1  ;;  %4364 = vmatprep.mubr.msk.f32.mxu1 %vm4698_vm6, %v4697_v15 }
 0x3c6   : > { %v4302_v47 = vpop.f32.mrb[19].mxu0  ;;  %v4309_v48 = vpop.f32.mrb[17].mxu1  ;;  %v1703_v58 = vadd.f32 %v1702_v42, %v1655_v53 }
 0x3c7   : > { %v1705_v49 = vpop.f32.mrb[18].mxu1  ;;  %v1839_v47 = vld [vmem:[%s5426_s7 + $0x30] sm:$0xff] }
 0x3c8   : > { %v4310_v51 = vpop.f32.mrb[19].mxu1  ;;  %v1706_v0 = vadd.f32 %v1705_v49, %v1655_v53  ;;  %v1840_v49 = vld [vmem:[%s5426_s7 + $0x38] sm:$0xff] }
 0x3cb   : > { %v1764_v54 = vpop.f32.mrb[20].mxu0 }
 0x3cc   : > { %v1765_v56 = vadd.f32 %v1764_v54, %v1717_v50  ;;  %v4317_v57 = vpop.f32.mrb[21].mxu0 }
 0x3cd   : > { %v1767_v59 = vpop.f32.mrb[22].mxu0  ;;  %v5172_v60 = vpop.f32.mrb[20].mxu1 }
 0x3ce   : > { %v1768_v61 = vadd.f32 %v1767_v59, %v1717_v50  ;;  %v4318_v62 = vpop.f32.mrb[23].mxu0  ;;  %4358 = vmatpush3.xpose.msk.msra.mxu0 %vm1841_vm8, %v1765_v56  ;;  %v4325_v2 = vpop.f32.mrb[21].mxu1 }
 0x3cf   : > { %4367 = vmatprep.subr.mxu0 %v4697_v15  ;;  %v5174_v3 = vpop.f32.mrb[22].mxu1 }
 0x3d0   : > { %4363 = vmatpush3.xpose.msk.msra.mxu1 %vm1841_vm8, %v1768_v61  ;;  %v4326_v1 = vpop.f32.mrb[23].mxu1 }
 0x3d1   : > { %4360 = vmatmul.mubr.msk.f32.vlgmr.msra.gmra.mrb[32].mxu0 %vm1841_vm8, %v1703_v58  ;;  %4372 = vmatprep.subr.mxu1 %v4697_v15 }
 0x3d2   : > { %4368 = vmatpush3.msra.mxu0 %v1269_v45  ;;  %4369 = vmatprep.mubr.msk.f32.mxu0 %vm4698_vm6, %v4697_v15 }
 0x3d3   : > { %4365 = vmatmul.mubr.msk.f32.vlgmr.msra.gmra.mrb[28].mxu1 %vm1841_vm8, %v1706_v0  ;;  %4377 = vmatprep.subr.mxu0 %v4697_v15 }
 0x3d4   : > { %4373 = vmatpush3.msra.mxu1 %v1272_v46  ;;  %4374 = vmatprep.mubr.msk.f32.mxu1 %vm4698_vm6, %v4697_v15 }
 0x3d5   : > { %4382 = vmatprep.subr.mxu1 %v4697_v15 }
 0x47d   : > { %v1914_v5 = vpop.f32.mrb[24].mxu0 }
 0x47e   : > { %v1915_v6 = vadd.f32 %v1914_v5, %v1833_v4  ;;  %v4331_v7 = vpop.f32.mrb[25].mxu0 }
 0x480   : > { %v2450_v9 = vsel %vm1841_vm8, %v1915_v6, -inf }
 0x481   : > { %2451 = vmax.xlane.f32.xlu0 %v2450_v9  ;;  %v1990_v10 = vpop.f32.mrb[26].mxu0 }
 0x482   : > { %v1991_v12 = vadd.f32 %v1990_v10, %v1834_v8  ;;  %v4336_v13 = vpop.f32.mrb[27].mxu0 }
 0x484   : > { %v2453_v14 = vsel %vm1841_vm8, %v1991_v12, -inf }
 0x485   : > { %2454 = vmax.xlane.f32.xlu0 %v2453_v14 }
 0x48c   : > { %v2066_v18 = vpop.f32.mrb[28].mxu0 }
 0x48d   : > { %v2067_v23 = vadd.f32 %v2066_v18, %v1835_v17  ;;  %v4341_v24 = vpop.f32.mrb[29].mxu0 }
 0x48e   : > { %v2142_v25 = vpop.f32.mrb[24].mxu1 }
 0x48f   : > { %v2143_v26 = vadd.f32 %v2142_v25, %v1836_v22  ;;  %v4346_v27 = vpop.f32.mrb[25].mxu1  ;;  %v2456_v28 = vsel %vm1841_vm8, %v2067_v23, -inf }
 0x490   : > { %2457 = vmax.xlane.f32.xlu1 %v2456_v28 }
 0x491   : > { %v2459_v29 = vsel %vm1841_vm8, %v2143_v26, -inf }
 0x494   : > { %2460 = vmax.xlane.f32.xlu1 %v2459_v29 }
 0x495   : > { %v2218_v31 = vpop.f32.mrb[30].mxu0 }
 0x496   : > { %v2219_v33 = vadd.f32 %v2218_v31, %v1837_v30  ;;  %v4351_v34 = vpop.f32.mrb[31].mxu0 }
 0x497   : > { %v2294_v35 = vpop.f32.mrb[26].mxu1 }
 0x498   : > { %v2295_v36 = vadd.f32 %v2294_v35, %v1838_v32  ;;  %v4356_v37 = vpop.f32.mrb[27].mxu1  ;;  %v2462_v39 = vsel %vm1841_vm8, %v2219_v33, -inf }
 0x499   : > { %2463 = vmax.xlane.f32.xlu0 %v2462_v39 }
 0x49a   : > { %v2465_v42 = vsel %vm1841_vm8, %v2295_v36, -inf }
 0x49b   : > { %2466 = vmax.xlane.f32.xlu1 %v2465_v42 }
 0x4a4   : > { %v2370_v48 = vpop.f32.mrb[32].mxu0 }
 0x4a5   : > { %v2371_v50 = vadd.f32 %v2370_v48, %v1839_v47  ;;  %v4361_v51 = vpop.f32.mrb[33].mxu0 }
 0x4a6   : > { %v2446_v53 = vpop.f32.mrb[28].mxu1 }
 0x4a7   : > { %v2447_v54 = vadd.f32 %v2446_v53, %v1840_v49  ;;  %v4366_v55 = vpop.f32.mrb[29].mxu1  ;;  %v2468_v56 = vsel %vm1841_vm8, %v2371_v50, -inf }
 0x4a8   : > { %2469 = vmax.xlane.f32.xlu0 %v2468_v56 }
 0x4a9   : > { %v2471_v57 = vsel %vm1841_vm8, %v2447_v54, -inf }
 0x4aa   : > { %2472 = vmax.xlane.f32.xlu1 %v2471_v57 }
 0x50e   : > { %v2452_v58 = vpop.xlane.xlu0 %2451 }
 0x50f   : > { %v2474_v59 = vsub.f32 %v1915_v6, %v2452_v58 }
 0x511   : > { %v2482_v61 = vmul.f32 1.442695, %v2474_v59 }
 0x512   : > { %v2455_v62 = vpop.xlane.xlu0 %2454 }
 0x513   : > { %4572 = vpow2.f32 %v2482_v61  ;;  %v2475_v45 = vsub.f32 %v1991_v12, %v2455_v62 }
 0x515   : > { %v2484_v0 = vmul.f32 1.442695, %v2475_v45 }
 0x517   : > { %4574 = vpow2.f32 %v2484_v0 }
 0x51d   : > { %v4573_v46 = vpop.eup %4572  ;;  %v2458_v2 = vpop.xlane.xlu1 %2457 }
 0x51e   : > { %v2476_v1 = vsub.f32 %v2067_v23, %v2458_v2  ;;  %v2498_v4 = vsel %vm1841_vm8, %v4573_v46, 0.0 }
 0x51f   : > { %2499 = vadd.xlane.f32.xlu0 %v2498_v4  ;;  %v1779_v4 = vrot.slane %v5152_v52, %v5143_v40 }
 0x520   : > { %v2486_v5 = vmul.f32 1.442695, %v2476_v1 }
 0x521   : > { %v4575_v7 = vpop.eup %4574  ;;  %v2461_v8 = vpop.xlane.xlu1 %2460 }
 0x522   : > { %4576 = vpow2.f32 %v2486_v5  ;;  %v2477_v9 = vsub.f32 %v2143_v26, %v2461_v8  ;;  %v2501_v10 = vsel %vm1841_vm8, %v4575_v7, 0.0  ;;  %v1827_v8 = vadd.f32 %v5172_v60, %v1779_v4 }
 0x523   : > { %2502 = vadd.xlane.f32.xlu1 %v2501_v10 }
 0x524   : > { %v2488_v6 = vmul.f32 1.442695, %v2477_v9 }
 0x526   : > { %4578 = vpow2.f32 %v2488_v6  ;;  %v2464_v13 = vpop.xlane.xlu0 %2463 }
 0x527   : > { %v2478_v12 = vsub.f32 %v2219_v33, %v2464_v13 }
 0x528   : > { %v2467_v14 = vpop.xlane.xlu1 %2466 }
 0x529   : > { %v2490_v17 = vmul.f32 1.442695, %v2478_v12  ;;  %v2479_v18 = vsub.f32 %v2295_v36, %v2467_v14  ;;  %v3123_v12 = vld [vmem:[%s4854_s22] sm:$0xf] }
 0x52a   : > { %v3129_v14 = vsel %vm3127_vm9, %v3123_v12, 0 }
 0x52b   : > { %4580 = vpow2.f32 %v2490_v17  ;;  %v2492_v22 = vmul.f32 1.442695, %v2479_v18  ;;  %v4051_v17 = vld [vmem:[%s4854_s22 + $0x4] sm:$0xf] }
 0x52c   : > { %v4577_v23 = vpop.eup %4576  ;;  %v3185_v18 = vsel %vm3127_vm9, %v4051_v17, 0 }
 0x52d   : > { %4582 = vpow2.f32 %v2492_v22  ;;  %v2504_v24 = vsel %vm1841_vm8, %v4577_v23, 0.0 }
 0x52e   : > { %2505 = vadd.xlane.f32.xlu0 %v2504_v24  ;;  %v4053_v24 = vld [vmem:[%s4854_s22 + $0x8] sm:$0xf] }
 0x530   : > { %v4579_v25 = vpop.eup %4578 }
 0x531   : > { %v2507_v26 = vsel %vm1841_vm8, %v4579_v25, 0.0 }
 0x532   : > { %2508 = vadd.xlane.f32.xlu1 %v2507_v26 }
 0x535   : > { %v5212_v27 = vpop.eup %4580  ;;  %v2470_v28 = vpop.xlane.xlu0 %2469 }
 0x536   : > { %v2480_v29 = vsub.f32 %v2371_v50, %v2470_v28  ;;  %v2510_v30 = vsel %vm1841_vm8, %v5212_v27, 0.0  ;;  %v1407_v50 = vrot.slane %v5152_v52, %v5099_v63  ;;  %v3237_v28 = vsel %vm3127_vm9, %v4053_v24, 0 }
 0x537   : > { %v5216_v31 = vpop.eup %4582  ;;  %2511 = vadd.xlane.f32.xlu0 %v2510_v30  ;;  %v2473_v32 = vpop.xlane.xlu1 %2472 }
 0x538   : > { %v2494_v33 = vmul.f32 1.442695, %v2480_v29  ;;  %v2481_v34 = vsub.f32 %v2447_v54, %v2473_v32  ;;  %v2513_v35 = vsel %vm1841_vm8, %v5216_v31, 0.0  ;;  %v1455_v54 = vadd.f32 %v5111_v11, %v1407_v50 }
 0x539   : > { %2514 = vadd.xlane.f32.xlu1 %v2513_v35  ;;  %v1458_v58 = vadd.f32 %v5117_v21, %v1407_v50  ;;  %v1593_v11 = vrot.slane %v5152_v52, %v5114_v16 }
 0x53a   : > { %4584 = vpow2.f32 %v2494_v33  ;;  %v2496_v36 = vmul.f32 1.442695, %v2481_v34 }
 0x53b   : > { %v1641_v21 = vadd.f32 %v5137_v38, %v1593_v11  ;;  %v1644_v1 = vadd.f32 %v5145_v41, %v1593_v11  ;;  %v1830_v41 = vadd.f32 %v5174_v3, %v1779_v4 }
 0x53c   : > { %4586 = vpow2.f32 %v2496_v36 }
 0x544   : > { %v5220_v37 = vpop.eup %4584 }
 0x545   : > { %v2516_v39 = vsel %vm1841_vm8, %v5220_v37, 0.0 }
 0x546   : > { %v5224_v42 = vpop.eup %4586  ;;  %2517 = vadd.xlane.f32.xlu0 %v2516_v39 }
 0x547   : > { %v2519_v47 = vsel %vm1841_vm8, %v5224_v42, 0.0 }
 0x548   : > { %2520 = vadd.xlane.f32.xlu1 %v2519_v47 }
 0x5ac   : > { %v2500_v48 = vpop.xlane.xlu0 %2499 }
 0x5ad   : > { %4588 = vrcp.f32 %v2500_v48 }
 0x5b0   : > { %v2503_v49 = vpop.xlane.xlu1 %2502 }
 0x5b1   : > { %4590 = vrcp.f32 %v2503_v49 }
 0x5b7   : > { %v4589_v51 = vpop.eup %4588 }
 0x5b8   : > { %v2530_v53 = vmul.f32 %v4589_v51, %v4573_v46 }
 0x5ba   : > { %4370 = vmatmul.mubr.msk.f32.vlgmr.msra.gmra.mrb[34].mxu0 %vm1841_vm8, %v2530_v53 }
 0x5bb   : > { %v4591_v55 = vpop.eup %4590  ;;  %4378 = vmatpush3.msra.mxu0 %v1455_v54  ;;  %v2506_v56 = vpop.xlane.xlu0 %2505  ;;  %4379 = vmatprep.mubr.msk.f32.mxu0 %vm4698_vm6, %v4697_v15 }
 0x5bc   : > { %v2531_v57 = vmul.f32 %v4591_v55, %v4575_v7  ;;  %4592 = vrcp.f32 %v2506_v56  ;;  %4387 = vmatprep.subr.mxu0 %v4697_v15 }
 0x5be   : > { %4375 = vmatmul.mubr.msk.f32.vlgmr.msra.gmra.mrb[30].mxu1 %vm1841_vm8, %v2531_v57 }
 0x5bf   : > { %4383 = vmatpush3.msra.mxu1 %v1458_v58  ;;  %v2509_v59 = vpop.xlane.xlu1 %2508  ;;  %4384 = vmatprep.mubr.msk.f32.mxu1 %vm4698_vm6, %v4697_v15  ;;  %v5299_v58 = vld [vmem:[%s4881_s4] sm:$0x3f]  ;;  %s5479_s4 = scalar_lea.vmem %s5436_s17, %s4832_s29 }
 0x5c0   : > { %4594 = vrcp.f32 %v2509_v59  ;;  %4392 = vmatprep.subr.mxu1 %v4697_v15  ;;  %v3175_v59 = vrot.slane %v5299_v58, %v5078_v44 }
 0x5c4   : > { %v2512_v61 = vpop.xlane.xlu0 %2511 }
 0x5c5   : > { %4596 = vrcp.f32 %v2512_v61 }
 0x5c6   : > { %v4593_v62 = vpop.eup %4592  ;;  %v2515_v45 = vpop.xlane.xlu1 %2514 }
 0x5c7   : > { %v2532_v0 = vmul.f32 %v4593_v62, %v4577_v23  ;;  %4598 = vrcp.f32 %v2515_v45 }
 0x5c9   : > { %4380 = vmatmul.mubr.msk.f32.vlgmr.msra.gmra.mrb[36].mxu0 %vm1841_vm8, %v2532_v0 }
 0x5ca   : > { %v4595_v46 = vpop.eup %4594  ;;  %4388 = vmatpush3.msra.mxu0 %v1641_v21  ;;  %4389 = vmatprep.mubr.msk.f32.mxu0 %vm4698_vm6, %v4697_v15 }
 0x5cb   : > { %v2533_v2 = vmul.f32 %v4595_v46, %v4579_v25  ;;  %4397 = vmatprep.subr.mxu0 %v4697_v15 }
 0x5cd   : > { %4385 = vmatmul.mubr.msk.f32.vlgmr.msra.gmra.mrb[32].mxu1 %vm1841_vm8, %v2533_v2 }
 0x5ce   : > { %4393 = vmatpush3.msra.mxu1 %v1644_v1  ;;  %4394 = vmatprep.mubr.msk.f32.mxu1 %vm4698_vm6, %v4697_v15 }
 0x5cf   : > { %v4597_v38 = vpop.eup %4596  ;;  %4402 = vmatprep.subr.mxu1 %v4697_v15 }
 0x5d0   : > { %v2534_v5 = vmul.f32 %v4597_v38, %v5212_v27 }
 0x5d1   : > { %v4599_v7 = vpop.eup %4598 }
 0x5d2   : > { %v2535_v9 = vmul.f32 %v4599_v7, %v5216_v31  ;;  %4390 = vmatmul.mubr.msk.f32.vlgmr.msra.gmra.mrb[38].mxu0 %vm1841_vm8, %v2534_v5  ;;  %v4055_v31 = vld [vmem:[%s4854_s22 + $0xc] sm:$0xf]  ;;  %s5480_s22 = sld [smem:[#allocation22_spill]] (!%p4066_p5) }
 0x5d3   : > { %4398 = vmatpush3.msra.mxu0 %v1827_v8  ;;  %v2518_v52 = vpop.xlane.xlu0 %2517  ;;  %4399 = vmatprep.mubr.msk.f32.mxu0 %vm4698_vm6, %v4697_v15  ;;  %v3289_v35 = vsel %vm3127_vm9, %v4055_v31, 0 }
 0x5d4   : > { %4395 = vmatmul.mubr.msk.f32.vlgmr.msra.gmra.mrb[34].mxu1 %vm1841_vm8, %v2535_v9  ;;  %4600 = vrcp.f32 %v2518_v52  ;;  %4407 = vmatprep.subr.bf16.mxu0 %v4697_v15 }
 0x5d5   : > { %4403 = vmatpush3.msra.mxu1 %v1830_v41  ;;  %v2521_v10 = vpop.xlane.xlu1 %2520  ;;  %4404 = vmatprep.mubr.msk.f32.mxu1 %vm4698_vm6, %v4697_v15 }
 0x5d6   : > { %4602 = vrcp.f32 %v2521_v10  ;;  %4413 = vmatprep.subr.bf16.mxu1 %v4697_v15 }
 0x5de   : > { %v4601_v60 = vpop.eup %4600 }
 0x5df   : > { %v2536_v3 = vmul.f32 %v4601_v60, %v5220_v37 }
 0x5e0   : > { %v4603_v6 = vpop.eup %4602 }
 0x5e1   : > { %v2537_v13 = vmul.f32 %v4603_v6, %v5224_v42  ;;  %4400 = vmatmul.mubr.msk.f32.vlgmr.msra.gmra.mrb[40].mxu0 %vm1841_vm8, %v2536_v3 }
 0x5e2   : > { %4409 = vmatprep.mubr.msk.bf16.mxu0 %vm4698_vm6, %v4697_v15  ;;  %4408 = vmatpush3.bf16.msra.mxu0 %v3129_v14 }
 0x5e3   : > { %4405 = vmatmul.mubr.msk.f32.vlgmr.msra.gmra.mrb[36].mxu1 %vm1841_vm8, %v2537_v13  ;;  %4419 = vmatprep.subr.bf16.mxu0 %v4697_v15 }
 0x5e4   : > { %4415 = vmatprep.mubr.msk.bf16.mxu1 %vm4698_vm6, %v4697_v15  ;;  %4414 = vmatpush3.bf16.msra.mxu1 %v3185_v18 }
 0x5e5   : > { %4425 = vmatprep.subr.bf16.mxu1 %v4697_v15 }
 0x68d   : > { %v2607_v22 = vpop.f32.mrb[34].mxu0 }
 0x68e   : > { %v4371_v23 = vpop.f32.mrb[35].mxu0 }
 0x691   : > { %v2680_v25 = vpop.f32.mrb[30].mxu1 }
 0x692   : > { %v3122_v26 = vpack.c.bf16 %v2680_v25, %v2607_v22  ;;  %v4376_v27 = vpop.f32.mrb[31].mxu1 }
 0x694   : > { %4410 = vmatmul.mubr.msk.bf16.vlgmr.msra.gmra.mrb[44].mxu0 %vm1841_vm8, %v3122_v26 }
 0x695   : > { %4420 = vmatpush3.bf16.msra.mxu0 %v3237_v28  ;;  %4421 = vmatprep.mubr.msk.bf16.mxu0 %vm4698_vm6, %v4697_v15  ;;  %v4567_v28 = vld [vmem:[%s4859_s0 + $0x8] sm:$0xff]  }
 0x696   : > { %4431 = vmatprep.subr.bf16.mxu0 %v4697_v15 }
 0x69c   : > { %v2753_v29 = vpop.f32.mrb[36].mxu0 }
 0x69d   : > { %v4381_v30 = vpop.f32.mrb[37].mxu0 }
 0x6a0   : > { %v2826_v32 = vpop.f32.mrb[32].mxu1 }
 0x6a1   : > { %v3178_v33 = vpack.c.bf16 %v2826_v32, %v2753_v29  ;;  %v4386_v34 = vpop.f32.mrb[33].mxu1 }
 0x6a3   : > { %4416 = vmatmul.mubr.msk.bf16.vlgmr.msra.gmra.mrb[40].mxu1 %vm1841_vm8, %v3178_v33 }
 0x6a4   : > { %4426 = vmatpush3.bf16.msra.mxu1 %v3289_v35  ;;  %4427 = vmatprep.mubr.msk.bf16.mxu1 %vm4698_vm6, %v4697_v15  ;;  %v3366_v35 = vrot.slane %v5299_v58, %v5099_v63  ;;  %v4569_v63 = vld [vmem:[%s4865_s24 + $0x8] sm:$0xff]  }
 0x6a5   : > { %v2899_v36 = vpop.f32.mrb[38].mxu0  ;;  %4439 = vmatprep.subr.bf16.mxu1 %v4697_v15 }
 0x6a6   : > { %v4391_v37 = vpop.f32.mrb[39].mxu0 }
 0x6a7   : > { %v2972_v39 = vpop.f32.mrb[34].mxu1 }
 0x6a8   : > { %v3230_v42 = vpack.c.bf16 %v2972_v39, %v2899_v36  ;;  %v4396_v47 = vpop.f32.mrb[35].mxu1 }
 0x6aa   : > { %4422 = vmatmul.mubr.msk.bf16.vlgmr.msra.gmra.mrb[48].mxu0 %vm1841_vm8, %v3230_v42 }
 0x6ab   : > { %4435 = vmatprep.mubr.msk.bf16.mxu0 %vm4698_vm6, %v4697_v15 }
 0x6b4   : > { %v3045_v48 = vpop.f32.mrb[40].mxu0 }
 0x6b5   : > { %v4401_v49 = vpop.f32.mrb[41].mxu0 }
 0x6b6   : > { %v3118_v50 = vpop.f32.mrb[36].mxu1 }
 0x6b7   : > { %v3282_v51 = vpack.c.bf16 %v3118_v50, %v3045_v48  ;;  %v4406_v53 = vpop.f32.mrb[37].mxu1  ;;  %v3372_v48 = vrot.slane %v5299_v58, %v5114_v16  ;;  %v4057_v16 = vld [vmem:[%s5479_s4] ss:$0 sm:$0xff] }
 0x6b9   : > { %4428 = vmatmul.mubr.msk.bf16.vlgmr.msra.gmra.mrb[44].mxu1 %vm1841_vm8, %v3282_v51 }
 0x6ba   : > { %4447 = vmatprep.mubr.msk.bf16.mxu1 %vm4698_vm6, %v4697_v15 }
 0x767   : > { %v3165_v54 = vpop.f32.mrb[44].mxu0 }
 0x768   : > { %v4411_v55 = vpop.f32.mrb[45].mxu0  ;;  %v3176_v11 = vadd.f32 %v3175_v59, %v3165_v54  ;;  %v4568_v54 = vld [vmem:[%s4865_s24] sm:$0xff]  }
 0x769   : > { %v3168_v56 = vpop.f32.mrb[46].mxu0  ;;  %4440 = vmatpush3.bf16.msra.mxu1 %v4568_v54  ;;  %v4570_v55 = vld [vmem:[%s4865_s24 + $0x10] sm:$0xff]  }
 0x76a   : > { %v4412_v57 = vpop.f32.mrb[47].mxu0  ;;  %v3177_v62 = vadd.f32 %v3175_v59, %v3168_v56  ;;  %4441 = vmatprep.subr.bf16.mxu1 %v4697_v15  ;;  %v4571_v56 = vld [vmem:[%s4865_s24 + $0x18] sm:$0xff]  }
 0x76d   : > { %4442 = vmatpush3.bf16.msra.mxu1 %v4569_v63 }
 0x76e   : > { %4443 = vmatprep.subr.bf16.mxu1 %v4697_v15 }
 0x771   : > { %4444 = vmatpush3.bf16.msra.mxu1 %v4570_v55 }
 0x772   : > { %4445 = vmatprep.subr.bf16.mxu1 %v4697_v15 }
 0x775   : > { %4446 = vmatpush3.bf16.msra.mxu1 %v4571_v56 }
 0x776   : > { %v3221_v61 = vpop.f32.mrb[40].mxu1 }
 0x777   : > { %v3228_v45 = vadd.f32 %v3221_v61, %v3176_v11  ;;  %v4417_v0 = vpop.f32.mrb[41].mxu1 }
 0x778   : > { %v3224_v21 = vpop.f32.mrb[42].mxu1 }
 0x779   : > { %v3229_v46 = vadd.f32 %v3224_v21, %v3177_v62  ;;  %v4418_v2 = vpop.f32.mrb[43].mxu1 }
 0x77d   : > { %v3273_v1 = vpop.f32.mrb[48].mxu0 }
 0x77e   : > { %v3280_v4 = vadd.f32 %v3273_v1, %v3228_v45  ;;  %v4423_v38 = vpop.f32.mrb[49].mxu0 }
 0x77f   : > { %v3276_v5 = vpop.f32.mrb[50].mxu0 }
 0x780   : > { %v3281_v7 = vadd.f32 %v3276_v5, %v3229_v46  ;;  %v4424_v8 = vpop.f32.mrb[51].mxu0 }
 0x78c   : > { %v3325_v9 = vpop.f32.mrb[44].mxu1 }
 0x78d   : > { %v3332_v41 = vadd.f32 %v3325_v9, %v3280_v4  ;;  %v4429_v52 = vpop.f32.mrb[45].mxu1 }
 0x78e   : > { %v3328_v10 = vpop.f32.mrb[46].mxu1 }
 0x78f   : > { %v3333_v60 = vadd.f32 %v3328_v10, %v3281_v7  ;;  %v4430_v44 = vpop.f32.mrb[47].mxu1  ;;  %v3334_v3 = vadd.f32 %v3332_v41, %v4977_v19 }
 0x791   : > { %v3336_v6 = vsel %vm1108_vm7, %v3334_v3, 0.0  ;;  %v3335_v13 = vadd.f32 %v3333_v60, %v4979_v20  ;;  %v4566_v20 = vld [vmem:[%s4859_s0] sm:$0xff]  }
 0x792   : > { %3337 = vadd.xlane.f32.xlu0 %v3336_v6  ;;  %4432 = vmatpush3.bf16.msra.mxu0 %v4566_v20 }
 0x793   : > { %v3339_v12 = vsel %vm1108_vm7, %v3335_v13, 0.0  ;;  %4433 = vmatprep.subr.bf16.mxu0 %v4697_v15 }
 0x794   : > { %3340 = vadd.xlane.f32.xlu1 %v3339_v12 }
 0x796   : > { %4434 = vmatpush3.bf16.msra.mxu0 %v4567_v28 }
 0x81f   : > { %v3338_v14 = vpop.xlane.xlu0 %3337 }
 0x820   : > { %v3343_v17 = vmul.f32 0.03125, %v3338_v14 }
 0x821   : > { %v3341_v18 = vpop.xlane.xlu1 %3340 }
 0x822   : > { %v3345_v22 = vsub.f32 %v3334_v3, %v3343_v17  ;;  %v3344_v23 = vmul.f32 0.03125, %v3341_v18 }
 0x824   : > { %v3346_v24 = vsub.f32 %v3335_v13, %v3344_v23  ;;  %v3347_v25 = vmul.f32 %v3345_v22, %v3345_v22  ;;  %v3473_v13 = vrot.slane %v5299_v58, %v5143_v40 }
 0x826   : > { %v3349_v26 = vsel %vm1108_vm7, %v3347_v25, 0.0  ;;  %v3348_v19 = vmul.f32 %v3346_v24, %v3346_v24 }
 0x827   : > { %3350 = vadd.xlane.f32.xlu0 %v3349_v26 }
 0x828   : > { %v3352_v27 = vsel %vm1108_vm7, %v3348_v19, 0.0 }
 0x829   : > { %3353 = vadd.xlane.f32.xlu1 %v3352_v27 }
 0x8b4   : > { %v3351_v29 = vpop.xlane.xlu0 %3350 }
 0x8b5   : > { %v3355_v30 = vmul.f32 0.03125, %v3351_v29 }
 0x8b6   : > { %v3354_v31 = vpop.xlane.xlu1 %3353 }
 0x8b7   : > { %v3357_v32 = vadd.f32 1e-12, %v3355_v30  ;;  %v3356_v33 = vmul.f32 0.03125, %v3354_v31 }
 0x8b9   : > { %4604 = vrsqrt.f32 %v3357_v32  ;;  %v3358_v34 = vadd.f32 1e-12, %v3356_v33 }
 0x8bb   : > { %4606 = vrsqrt.f32 %v3358_v34 }
 0x8c3   : > { %v4605_v36 = vpop.eup %4604 }
 0x8c4   : > { %v3361_v37 = vmul.f32 %v4605_v36, %v3345_v22 }
 0x8c5   : > { %v4607_v39 = vpop.eup %4606 }
 0x8c6   : > { %v3367_v42 = vmul.f32 %v3366_v35, %v3361_v37  ;;  %v3362_v47 = vmul.f32 %v4607_v39, %v3346_v24 }
 0x8c8   : > { %v3368_v49 = vmul.f32 %v3366_v35, %v3362_v47  ;;  %v3373_v50 = vadd.f32 %v3372_v48, %v3367_v42 }
 0x8ca   : > { %v3374_v51 = vadd.f32 %v3372_v48, %v3368_v49  ;;  %v3573_v48 = vsub.s32 4, %v5075_v43  ;;  %v3579_v49 = vsub.s32 5, %v5075_v43  ;;  %v3589_v43 = vld [vmem:[%s5427_s8] sm:$0xff] (!%p4066_p5) }
 0x8cc   : > { %v3375_v53 = vpack.c.bf16 %v3374_v51, %v3373_v50 }
 0x8ce   : > { %4436 = vmatmul.mubr.msk.bf16.vlgmr.msra.gmra.mrb[52].mxu0 %vm1108_vm7, %v3375_v53  ;;  %v3580_v53 = vrot.slane %v5299_v58, %v3579_v49 }
 0x9a1   : > { %v3436_v57 = vpop.f32.mrb[52].mxu0 }
 0x9a2   : > { %v3437_v59 = vadd.f32 %v4057_v16, %v3436_v57  ;;  %v4437_v11 = vpop.f32.mrb[53].mxu0 }
 0x9a3   : > { %v3439_v61 = vpop.f32.mrb[54].mxu0  ;;  %v4699_v11 = vmov (!%p4066_p5), 0  }
 0x9a4   : > { %v3445_v62 = vmul.f32 0.044715, %v3437_v59  ;;  %v3440_v45 = vadd.f32 %v4057_v16, %v3439_v61  ;;  %v4438_v0 = vpop.f32.mrb[55].mxu0  ;;  %v3443_v52 = vmul.f32 0.5, %v3437_v59  ;;  %4616 = vset.pattern.permute.xlu0 (!%p4066_p5), %v4699_v11  ;;  %v3618_v61 = vsel (!%p4066_p5), %vm3617_vm11, %v3589_v43, 0.0  ;;  %4617 = vset.pattern.permute.xlu1 (!%p4066_p5), %v4699_v11 }
 0x9a6   : > { %v3447_v21 = vmul.f32 %v3445_v62, %v3437_v59  ;;  %v3446_v46 = vmul.f32 0.044715, %v3440_v45  ;;  %v3444_v10 = vmul.f32 0.5, %v3440_v45 }
 0x9a8   : > { %v3449_v2 = vmul.f32 %v3447_v21, %v3437_v59  ;;  %v3448_v1 = vmul.f32 %v3446_v46, %v3440_v45 }
 0x9aa   : > { %v3451_v4 = vadd.f32 %v3449_v2, %v3437_v59  ;;  %v3450_v38 = vmul.f32 %v3448_v1, %v3440_v45 }
 0x9ac   : > { %v3453_v15 = vmul.f32 0.7978846, %v3451_v4  ;;  %v3452_v5 = vadd.f32 %v3450_v38, %v3440_v45  ;;  %v3619_v45 = vrot.slane (!%p4066_p5), %v3618_v61, 4 }
 0x9ae   : > { %4608 = vtanh.f32 %v3453_v15  ;;  %v3454_v7 = vmul.f32 0.7978846, %v3452_v5  ;;  %v3620_v21 = vadd.f32 (!%p4066_p5), %v3619_v45, %v3618_v61 }
 0x9b0   : > { %4610 = vtanh.f32 %v3454_v7  ;;  %v3621_v2 = vrot.slane (!%p4066_p5), %v3620_v21, 2 }
 0x9b2   : > { %v3622_v4 = vadd.f32 (!%p4066_p5), %v3621_v2, %v3620_v21 }
 0x9b4   : > { %v3623_v15 = vrot.slane (!%p4066_p5), %v3622_v4, 1 }
 0x9b6   : > { %v3624_v7 = vadd.f32 (!%p4066_p5), %v3623_v15, %v3622_v4 }
 0x9b8   : > { %v4609_v8 = vpop.eup %4608 }
 0x9b9   : > { %v3457_v9 = vadd.f32 1.0, %v4609_v8 }
 0x9ba   : > { %v4611_v41 = vpop.eup %4610 }
 0x9bb   : > { %v3458_v60 = vadd.f32 1.0, %v4611_v41  ;;  %v3459_v44 = vmul.f32 %v3457_v9, %v3443_v52  ;;  %v3632_v9 = vmax.f32 (!%p4066_p5), %v3624_v7, 1.0  ;;  %v4700_v52 = vmov (!%p4066_p5), 0.0|0.0  }
 0x9bc   : > { %4494 = vmatprep.subr.bf16.mxu0 (!%p4066_p5), %v4700_v52 }
 0x9bd   : > { %v3460_v3 = vmul.f32 %v3458_v60, %v3444_v10  ;;  %v3648_v10 = vld [vmem:[%s5437_s18] sm:$0xff] (!%p4066_p5)  ;;  %v3649_v60 = vld [vmem:[%s5437_s18 + $0x8] sm:$0xff] (!%p4066_p5) }
 0x9bf   : > { %v3461_v6 = vpack.c.bf16 %v3460_v3, %v3459_v44  ;;  %v4495_v44 = vpack.c.bf16 (!%p4066_p5), %v3649_v60, %v3648_v10 }
 0x9c1   : > { %4448 = vmatmul.mubr.msk.bf16.vlgmr.msra.gmra.mrb[48].mxu1 %vm3498_vm10, %v3461_v6  ;;  %4496 = vmatpush3.bf16.msra.mxu0 (!%p4066_p5), %v4495_v44 }
 0x9c2   : > { %4497 = vmatprep.subr.bf16.mxu0 (!%p4066_p5), %v4700_v52 }
 0xa94   : > { %v3536_v12 = vpop.f32.mrb[48].mxu1 }
 0xa95   : > { %v3537_v14 = vadd.f32 %v3536_v12, %v3473_v13  ;;  %v4449_v17 = vpop.f32.mrb[49].mxu1  ;;  %v3651_v12 = vld [vmem:[%s5437_s18 + $0x18] sm:$0xff] (!%p4066_p5) }
 0xa96   : > { %v3539_v18 = vpop.f32.mrb[50].mxu1  ;;  %v4702_v17 = vmov (!%p4066_p5), 0.0  }
 0xa97   : > { %v3540_v22 = vadd.f32 %v3539_v18, %v3473_v13  ;;  %v4450_v23 = vpop.f32.mrb[51].mxu1  ;;  %v3543_v24 = vadd.f32 %v3537_v14, %v3373_v50  ;;  %v3574_v50 = vrot.slane %v5299_v58, %v3573_v48  ;;  %v3590_v58 = vld [vmem:[%s5427_s8 + $0x8] sm:$0xff] (!%p4066_p5)  ;;  %v3650_v13 = vld [vmem:[%s5437_s18 + $0x10] sm:$0xff] (!%p4066_p5)  ;;  %4459 = vmatprep.mubr.msk.f32.mxu0 (!%p4066_p5), %vm4701_vm12, %v4702_v17  ;;  %v4067_v48 = vld [vmem:[%s5438_s19] ss:$0 sm:$0xff] (!%p4066_p5) }
 0xa98   : > { %v3625_v62 = vsel (!%p4066_p5), %vm3617_vm11, %v3590_v58, 0.0  ;;  %v4498_v14 = vpack.c.bf16 (!%p4066_p5), %v3651_v12, %v3650_v13 }
 0xa99   : > { %v3545_v25 = vsel %vm1108_vm7, %v3543_v24, 0.0  ;;  %v3544_v26 = vadd.f32 %v3540_v22, %v3374_v51  ;;  %v3626_v0 = vrot.slane (!%p4066_p5), %v3625_v62, 4 }
 0xa9a   : > { %3546 = vadd.xlane.f32.xlu0 %v3545_v25  ;;  %4499 = vmatpush3.bf16.msra.mxu0 (!%p4066_p5), %v4498_v14 }
 0xa9b   : > { %v3548_v19 = vsel %vm1108_vm7, %v3544_v26, 0.0  ;;  %v3627_v46 = vadd.f32 (!%p4066_p5), %v3626_v0, %v3625_v62 }
 0xa9c   : > { %3549 = vadd.xlane.f32.xlu1 %v3548_v19 }
 0xa9d   : > { %v3628_v1 = vrot.slane (!%p4066_p5), %v3627_v46, 2 }
 0xa9f   : > { %v3629_v38 = vadd.f32 (!%p4066_p5), %v3628_v1, %v3627_v46 }
 0xaa1   : > { %v3630_v5 = vrot.slane (!%p4066_p5), %v3629_v38, 1 }
 0xaa3   : > { %v3631_v8 = vadd.f32 (!%p4066_p5), %v3630_v5, %v3629_v38 }
 0xaa5   : > { %v3633_v41 = vmax.f32 (!%p4066_p5), %v3631_v8, 1.0 }
 0xb27   : > { %v3547_v27 = vpop.xlane.xlu0 %3546 }
 0xb28   : > { %v3551_v20 = vmul.f32 0.03125, %v3547_v27 }
 0xb29   : > { %v3550_v28 = vpop.xlane.xlu1 %3549 }
 0xb2a   : > { %v3553_v29 = vsub.f32 %v3543_v24, %v3551_v20  ;;  %v3552_v30 = vmul.f32 0.03125, %v3550_v28 }
 0xb2c   : > { %v3554_v40 = vsub.f32 %v3544_v26, %v3552_v30  ;;  %v3555_v31 = vmul.f32 %v3553_v29, %v3553_v29 }
 0xb2e   : > { %v3557_v32 = vsel %vm1108_vm7, %v3555_v31, 0.0  ;;  %v3556_v33 = vmul.f32 %v3554_v40, %v3554_v40 }
 0xb2f   : > { %3558 = vadd.xlane.f32.xlu0 %v3557_v32 }
 0xb30   : > { %v3560_v34 = vsel %vm1108_vm7, %v3556_v33, 0.0 }
 0xb31   : > { %3561 = vadd.xlane.f32.xlu1 %v3560_v34 }
 0xb45   : > { %3593 = vperm.xlu0 (!%p4066_p5), %4616, %v3589_v43  }
 0xb49   : > { %3598 = vperm.xlu0 (!%p4066_p5), %4616, %v3590_v58  }
 0xbbc   : > { %v3559_v35 = vpop.xlane.xlu0 %3558 }
 0xbbd   : > { %v3563_v36 = vmul.f32 0.03125, %v3559_v35 }
 0xbbe   : > { %v3562_v37 = vpop.xlane.xlu1 %3561 }
 0xbbf   : > { %v3565_v39 = vadd.f32 1e-12, %v3563_v36  ;;  %v3564_v42 = vmul.f32 0.03125, %v3562_v37 }
 0xbc1   : > { %4612 = vrsqrt.f32 %v3565_v39  ;;  %v3566_v47 = vadd.f32 1e-12, %v3564_v42 }
 0xbc3   : > { %4614 = vrsqrt.f32 %v3566_v47 }
 0xbc4   : > { %4618 = vrcp.f32 (!%p4066_p5), %v3632_v9  ;;  %v3594_v18 = vpop.permute.xlu0 (!%p4066_p5), %3593 }
 0xbc5   : > { %4620 = vrcp.f32 (!%p4066_p5), %v3633_v41 }
 0xbc8   : > { %v3599_v23 = vpop.permute.xlu0 (!%p4066_p5), %3598 }
 0xbcb   : > { %v4613_v51 = vpop.eup %4612 }
 0xbcc   : > { %v3569_v54 = vmul.f32 %v4613_v51, %v3553_v29 }
 0xbcd   : > { %v4615_v63 = vpop.eup %4614 }
 0xbce   : > { %v3575_v55 = vmul.f32 %v3574_v50, %v3569_v54  ;;  %v3570_v56 = vmul.f32 %v4615_v63, %v3554_v40  ;;  %3588 = sbr.rel (%p4066_p5) target bundleno = 3615 (0xe1f), region = 112  ;;  %v4619_v3 = vpop.eup (!%p4066_p5), %4618 }
 0xbcf   : > { %3638 = vperm.xlu1 (!%p4066_p5), %4617, %v4619_v3   ;;  %v4621_v6 = vpop.eup (!%p4066_p5), %4620 }
 0xbd0   : > { %v3581_v16 = vadd.f32 %v3580_v53, %v3575_v55  ;;  %v3576_v57 = vmul.f32 %v3574_v50, %v3570_v56 }
 0xbd2   : > { %3583 = vst.msk [vmem:[#allocation2] sm:$0xff] %vm1108_vm7, %v3581_v16  ;;  %v3582_v59 = vadd.f32 %v3580_v53, %v3576_v57  ;;  %v3601_v22 = vmul.f32 (!%p4066_p5), %v3594_v18, %v3581_v16  ;;  %v3737_v16 = vld [vmem:[%s5480_s22] sm:$0x3] (!%p4066_p5) }
 0xbd3   : > { %3643 = vperm.xlu1 (!%p4066_p5), %4617, %v4621_v6  }
 0xbd4   : > { %3584 = vst.msk [vmem:[#allocation2 + $0x8] sm:$0xff] %vm1108_vm7, %v3582_v59  ;;  %v3603_v24 = vsel (!%p4066_p5), %vm1108_vm7, %v3601_v22, 0.0  ;;  %v3602_v25 = vmul.f32 (!%p4066_p5), %v3599_v23, %v3582_v59 }
 0xbd5   : > { %v3604_v19 = vrot.slane %v3603_v24, 4 }
 0xbd6   : > { %v3610_v26 = vsel %vm1108_vm7, %v3602_v25, 0.0 }
 0xbd7   : > { %v3611_v27 = vrot.slane %v3610_v26, 4  ;;  %v3605_v20 = vadd.f32 %v3604_v19, %v3603_v24 }
 0xbd9   : > { %v3612_v28 = vadd.f32 %v3611_v27, %v3610_v26  ;;  %v3606_v29 = vrot.slane %v3605_v20, 2 }
 0xbdb   : > { %v3613_v30 = vrot.slane %v3612_v28, 2  ;;  %v3607_v40 = vadd.f32 %v3606_v29, %v3605_v20 }
 0xbdd   : > { %v3614_v31 = vadd.f32 %v3613_v30, %v3612_v28  ;;  %v3608_v32 = vrot.slane %v3607_v40, 1 }
 0xbdf   : > { %v3615_v33 = vrot.slane %v3614_v31, 1  ;;  %v3609_v35 = vadd.f32 %v3608_v32, %v3607_v40 }
 0xbe1   : > { %v3616_v36 = vadd.f32 %v3615_v33, %v3614_v31 }
 0xc4e   : > { %v3639_v34 = vpop.permute.xlu1 %3638 }
 0xc4f   : > { %v3646_v39 = vmul.f32 %v3639_v34, %v3609_v35 }
 0xc52   : > { %v3644_v37 = vpop.permute.xlu1 %3643 }
 0xc53   : > { %v3647_v42 = vmul.f32 %v3644_v37, %v3616_v36 }
 0xc55   : > { %v3662_v47 = vsel %vm3661_vm13, %v3647_v42, %v3646_v39 }
 0xc56   : > { %4460 = vmatmul.mubr.msk.f32.vlgmr.msra.gmra.mrb[0].mxu0 %vm1108_vm7, %v3662_v47 }
 0xd29   : > { %v3731_v49 = vpop.f32.mrb[0].mxu0 }
 0xd2a   : > { %v3732_v50 = vadd.f32 %v4067_v48, %v3731_v49  ;;  %v4461_v51 = vpop.f32.mrb[1].mxu0 }
 0xd2c   : > { %v3741_v53 = vand.u32 2147483647, %v3732_v50  ;;  %3736 = vst.msk [vmem:[#allocation3] sm:$0x3] %vm3735_vm14, %v3732_v50  ;;  %v3738_v57 = vmax.f32 %v3732_v50, 0.0  ;;  %v3739_v59 = vmul.f32 %v3737_v16, %v3732_v50 }
 0xd2e   : > { %v3742_v54 = vsub.f32 0.0, %v3741_v53  ;;  %v3740_v58 = vsub.f32 %v3738_v57, %v3739_v59 }
 0xd30   : > { %v3743_v63 = vmul.f32 1.442695, %v3742_v54 }
 0xd32   : > { %4622 = vpow2.f32 %v3743_v63 }
 0xd3c   : > { %v4623_v55 = vpop.eup %4622 }
 0xd3d   : > { %v3745_v56 = vadd.f32 1.0, %v4623_v55 }
 0xd3f   : > { %4624 = vlog2.f32 %v3745_v56 }
 0xd49   : > { %v4625_v43 = vpop.eup %4624 }
 0xd4a   : > { %v3747_v11 = vmul.f32 0.6931472, %v4625_v43 }
 0xd4c   : > { %v3748_v61 = vadd.f32 %v3747_v11, %v3740_v58 }
 0xd4e   : > { %v3749_v62 = vsel %vm3735_vm14, %v3748_v61, 0.0 }
 0xd4f   : > { %3750 = vadd.xlane.f32.xlu0 %v3749_v62 }
 0xddc   : > { %v3751_v45 = vpop.xlane.xlu0 %3750 }
 0xddd   : > { %v3752_v0 = vrot.slane %v3751_v45, 4 }
 0xddf   : > { %v3753_v21 = vadd.f32 %v3752_v0, %v3751_v45 }
 0xde1   : > { %v3754_v46 = vrot.slane %v3753_v21, 2 }
 0xde3   : > { %v3755_v2 = vadd.f32 %v3754_v46, %v3753_v21 }
 0xde5   : > { %v3756_v1 = vrot.slane %v3755_v2, 1 }
 0xde7   : > { %v3757_v4 = vadd.f32 %v3756_v1, %v3755_v2 }
 0xde9   : > { %4503 = vpush %v3757_v4 }
 0xe1a   : > { %s4504_s0 = spop %4503 }
 0xe1b   : > { %v3759_v38 = vstv %s4504_s0 }
 0xe1c   : > { %v3761_v15 = vmul.f32 0.25, %v3759_v38 }
 0xe1e   : > { %3763 = vst.msk [vmem:[#allocation5] sm:$0x1] %vm3762_vm15, %v3761_v15 }
 0xe1f PF: > { %p4513_p6 = scmp.eq.s32.totalorder %s4826_s28, 1  ;;  %s4703_s4 = smov [#allocation3]  }
 0xe20   : > { %s3771_s29 = sshll.u32 %s4703_s4, 4  ;;  %s4704_s24 = smov [#allocation5]   ;;  %s3772_s29 = int_to_ptr.vmem [resolvable:$true] %s3771_s29 }
 0xe21   : > { %s3782_s6 = sshll.u32 %s4704_s24, 4  ;;  %s4626_s2 = scalar_lea.vmem %s3772_s29, 32  ;;  %s3783_s6 = int_to_ptr.vmem [resolvable:$true] %s3782_s6 }
 0xe22   : > { %p4627_p7 = scmp.ne.s32.totalorder %s3772_s29, %s4626_s2  ;;  %p4633_p10 = scmp.lt.s32.totalorder %s3772_s29, %s3772_s29 }
 0xe23   : > { %p4634_p11 = scmp.lt.s32.totalorder %s4626_s2, %s4626_s2 }
 0xe24   : > { %p4628_p8 = pnand %p4627_p7, %p4513_p6 }
 0xe25   : > { %p4635_p12 = por %p4634_p11, %p4633_p10 }
 0xe26   : > { %p4629_p9 = pneg %p4628_p8 }
 0xe28   : > { %p4636_p13 = pnand %p4635_p12, %p4629_p9 }
 0xe2a   : > { %4639 = shalt.err (!%p4636_p13)
}
 0xe2b   : > { %s5481_s30 = sld [smem:[#allocation23_spill]] }
 0xe31   : > { %s4640_s10 = scalar_lea.hbm %s5481_s30, 32 }
 0xe32   : > { %p4641_p0 = scmp.ne.s32.totalorder %s5481_s30, %s4640_s10  ;;  %p4646_p3 = scmp.lt.u32.totalorder %s4640_s10, %s5481_s30 }
 0xe34   : > { %p4642_p1 = pnand %p4641_p0, %p4513_p6 }
 0xe36   : > { %p4643_p2 = pneg %p4642_p1 }
 0xe38   : > { %p4648_p4 = pnand %p4646_p3, %p4643_p2 }
 0xe3a   : > { %4651 = shalt.err (!%p4648_p4)
}
 0xe3b   : > { %4506 = dma.vmem_to_hbm [thread:$0]  (%p4513_p6), %s3772_s29, 32, %s5481_s30, [#allocation4]  }
 0xe3c   : > { %s4652_s12 = scalar_lea.vmem %s3783_s6, 16  ;;  %s4658_s1 = scalar_lea.vmem %s3783_s6, 32 }
 0xe3d   : > { %p4653_p5 = scmp.ne.s32.totalorder %s3783_s6, %s4652_s12  ;;  %p4659_p9 = scmp.lt.s32.totalorder %s3783_s6, %s3783_s6 }
 0xe3e   : > { %p4660_p10 = scmp.lt.s32.totalorder %s4658_s1, %s4652_s12 }
 0xe3f   : > { %p4654_p7 = pnand %p4653_p5, %p4513_p6 }
 0xe40   : > { %p4661_p11 = por %p4660_p10, %p4659_p9 }
 0xe41   : > { %p4655_p8 = pneg %p4654_p7 }
 0xe43   : > { %p4662_p12 = pnand %p4661_p11, %p4655_p8 }
 0xe45   : > { %4665 = shalt.err (!%p4662_p12)
}
 0xe46   : > { %s5482_s4 = sld [smem:[#allocation24_spill]] }
 0xe4c   : > { %s4666_s24 = scalar_lea.hbm %s5482_s4, 16 }
 0xe4d   : > { %p4667_p13 = scmp.ne.s32.totalorder %s5482_s4, %s4666_s24  ;;  %p4672_p2 = scmp.lt.u32.totalorder %s4666_s24, %s5482_s4 }
 0xe4f   : > { %p4668_p0 = pnand %p4667_p13, %p4513_p6 }
 0xe51   : > { %p4669_p1 = pneg %p4668_p0 }
 0xe53   : > { %p4674_p3 = pnand %p4672_p2, %p4669_p1 }
 0xe55   : > { %4677 = shalt.err (!%p4674_p3)
}
 0xe56   : > { %4508 = dma.vmem_to_hbm [thread:$0]  (%p4513_p6), %s3783_s6, 16, %s5482_s4, [#allocation6]  }
 0xe57   : > { %4683 = dma.done.wait (%p4513_p6), [#allocation4], 32  }
 0xe58   : > { %4685 = vsyncadd (%p4513_p6), [#allocation4], 4294967264 }
 0xe59   : > { %4687 = dma.done.wait (%p4513_p6), [#allocation6], 16  }
 0xe5a   : > { %4689 = vsyncadd (%p4513_p6), [#allocation6], 4294967280 }
 0xe5b PF: > { %s5483_s3 = sld [smem:[#allocation9_spill]] }
 0xe61   : > { %s35_s3 = sadd.s32 1, %s5483_s3  }
 0xe62   : > { %p32_p4 = scmp.ge.s32.totalorder %s35_s3, 4  }
 0xe64   :  { %34 = sbr.rel (!%p32_p4) target bundleno = 18 (0x12), region = 183 }
 0xe6b   :  { %3799 = vsyncpa [#allocation4], 1 }
 0xe6c   :  { %3801 = vsyncpa [#allocation4 + $0x1], 1 }
 0xe6d   :  { %3802 = vsyncpa [#allocation6], 1 }

</bundles_post_ra>
